<compile_context>
chip_gen: v7x
topology: tpu7x:2x2x1
jax: 0.10.0
libtpu: 0.0.40
codegen_flags: <defaults>
</compile_context>

<pallas_src>
import functools
import math

import jax
import jax.numpy as jnp
import numpy as np
from jax.experimental import pallas as pl
from jax.experimental.pallas import tpu as pltpu

_MASK_FILL = -1000000000.0             # masked_fill value used by the PyTorch module
_LN_EPS = 1e-5                         # nn.LayerNorm default eps
_EXACT = jax.lax.Precision.HIGHEST     # only for the one-hot embedding gather (exactness)


# ---------------------------------------------------------------------------
# Shared math helpers
# ---------------------------------------------------------------------------
def _layernorm(x, g, b):
    mu = jnp.mean(x, axis=-1, keepdims=True)
    var = jnp.mean(jnp.square(x - mu), axis=-1, keepdims=True)
    return (x - mu) * jax.lax.rsqrt(var + _LN_EPS) * g + b


def _softmax_last(x):
    m = jnp.max(x, axis=-1, keepdims=True)
    e = jnp.exp(x - m)
    return e / jnp.sum(e, axis=-1, keepdims=True)


def _softmax_last_fast(x):
    # EUP reciprocal (approx) keeps the divide off the VPU; rel err ~2^-12.
    m = jnp.max(x, axis=-1, keepdims=True)
    e = jnp.exp(x - m)
    return e * pl.reciprocal(jnp.sum(e, axis=-1, keepdims=True), approx=True)


# ---------------------------------------------------------------------------
# Fused forward kernel: embed+posenc -> block1 -> block2 -> cls head
# ---------------------------------------------------------------------------
def _forward_kernel(ids_ref, table_ref, pe_ref, mask_ref, *refs,
                    scale, batch, seq):
    (ln1_g1, ln1_b1, wq1, bq1, wo1, bo1, ln2_g1, ln2_b1, w11, b11, w21, b21,
     ln1_g2, ln1_b2, wq2, bq2, wo2, bo2, ln2_g2, ln2_b2, w12, b12, w22, b22,
     wh, bh,
     logits_ref, attn1_ref, attn2_ref) = refs

    n = ids_ref.shape[0]                 # B*S rows
    v = table_ref.shape[0]
    d = table_ref.shape[1]

    # --- net1 Embedder + net2 PositionalEncoder -------------------------------
    # Dense one-hot gather of all B*S rows in one MXU matmul (exact at HIGHEST).
    ids = ids_ref[...]                                               # (N, 1) int32
    onehot = (jax.lax.broadcasted_iota(jnp.int32, (n, v), 1) == ids
              ).astype(jnp.float32)                                  # (N, V)
    emb = jnp.dot(onehot, table_ref[...],
                  preferred_element_type=jnp.float32, precision=_EXACT)
    pe = jnp.broadcast_to(pe_ref[...][None], (batch, seq, d)).reshape(n, d)
    x = scale * emb + pe                                             # (N, D)

    mask = mask_ref[...]                                             # (B, S) int32
    maskq = (mask == 0)[:, None, :]                                  # (B, 1, S)
    inv_sqrt_d = 1.0 / math.sqrt(d)

    # --- TransformerBlock (shared body for net3_1 / net3_2) -------------------
    def block(x, p):
        (ln1_g, ln1_b, wq, bq, wo, bo, ln2_g, ln2_b, w1, b1, w2, b2) = p
        xn = _layernorm(x, ln1_g[...], ln1_b[...])
        # Reference module projects q, k AND v with q_linear; q = k = v here.
        q = jnp.dot(xn, wq[...], preferred_element_type=jnp.float32) + bq[...]
        qb = q.reshape(batch, seq, d)
        scores = jnp.einsum('bqd,bkd->bqk', qb, qb * inv_sqrt_d,
                            preferred_element_type=jnp.float32)      # (B, S, S)
        scores = jnp.where(maskq, _MASK_FILL, scores)
        attn = _softmax_last_fast(scores)                            # (B, S, S)
        ctx = jnp.einsum('bqk,bkd->bqd', attn, qb,
                         preferred_element_type=jnp.float32).reshape(n, d)
        attn_out = jnp.dot(ctx, wo[...],
                           preferred_element_type=jnp.float32) + bo[...]
        x2 = x + attn_out                                            # dropout_1 = id
        x2n = _layernorm(x2, ln2_g[...], ln2_b[...])
        h = jnp.maximum(
            jnp.dot(x2n, w1[...], preferred_element_type=jnp.float32) + b1[...],
            0.0)                                                     # ReLU
        ff = jnp.dot(h, w2[...], preferred_element_type=jnp.float32) + b2[...]
        return x2 + ff, attn                                         # dropout_2 = id

    p1 = (ln1_g1, ln1_b1, wq1, bq1, wo1, bo1, ln2_g1, ln2_b1, w11, b11, w21, b21)
    p2 = (ln1_g2, ln1_b2, wq2, bq2, wo2, bo2, ln2_g2, ln2_b2, w12, b12, w22, b22)

    x1, a1 = block(x, p1)                                            # net3_1
    x2, a2 = block(x1, p2)                                           # net3_2

    # --- net4 ClassificationHead (epilogue) ------------------------------------
    x0 = x2.reshape(batch, seq, d)[:, 0, :]                          # (B, D) token-0 rows
    logits_ref[...] = jnp.dot(x0, wh[...],
                              preferred_element_type=jnp.float32) + bh[...]
    attn1_ref[...] = a1
    attn2_ref[...] = a2


def transformer_classification_forward(token_ids, mask, params, pe):
    """Single fused pallas_call mirroring TransformerClassification.forward."""
    B, S = token_ids.shape
    V, D = params["emb"].shape
    C = params["w_head"].shape[1]
    N = B * S
    d_ff = params["block1"]["w1"].shape[1]

    # Bounds safety: nn.Embedding requires ids in [0, V); clamp in the wrapper.
    ids = jnp.clip(token_ids.astype(jnp.int32), 0, V - 1).reshape(N, 1)
    mask2 = mask.astype(jnp.int32)

    def bp(p):
        return (p["ln1_g"], p["ln1_b"], p["wq"], p["bq"], p["wo"], p["bo"],
                p["ln2_g"], p["ln2_b"], p["w1"], p["b1"], p["w2"], p["b2"])

    per_block_flops = (2 * N * D * D          # q projection
                       + 4 * B * S * S * D    # scores + ctx
                       + 2 * N * D * D        # out projection
                       + 4 * N * D * d_ff)    # FFN
    cost = pl.CostEstimate(
        flops=2 * N * V * D + 2 * per_block_flops + 2 * B * D * C,
        transcendentals=2 * B * S * S,
        bytes_accessed=4 * (N + B * S + V * D + S * D
                            + 2 * (2 * D * D + 2 * D * d_ff + 4 * D + d_ff)
                            + D * C + C + B * C + 2 * B * S * S))

    out_shape = (
        jax.ShapeDtypeStruct((B, C), jnp.float32),       # logits
        jax.ShapeDtypeStruct((B, S, S), jnp.float32),    # attn weights block 1
        jax.ShapeDtypeStruct((B, S, S), jnp.float32),    # attn weights block 2
    )
    kernel = functools.partial(_forward_kernel, scale=math.sqrt(D), batch=B, seq=S)

    logits, a1, a2 = pl.pallas_call(
        kernel,
        out_shape=out_shape,
        cost_estimate=cost,
        compiler_params=pltpu.CompilerParams(vmem_limit_bytes=32 * 1024 * 1024),
    )(ids, params["emb"], pe[:S], mask2,
      *bp(params["block1"]), *bp(params["block2"]),
      params["w_head"], params["b_head"])
    return logits, a1, a2


# ---------------------------------------------------------------------------
# Pure-JAX gold reference (full f32 matmuls) for correctness checking
# ---------------------------------------------------------------------------
def reference_forward(token_ids, mask, params, pe):
    table = params["emb"]
    B, S = token_ids.shape
    D = table.shape[1]
    P = jax.lax.Precision.HIGHEST
    x = math.sqrt(D) * jnp.take(table, token_ids, axis=0) + pe[None, :S, :]

    def block(x, p):
        xn = _layernorm(x, p["ln1_g"], p["ln1_b"])
        q = jnp.einsum("bsd,de->bse", xn, p["wq"], precision=P) + p["bq"]
        w = jnp.einsum("bqd,bkd->bqk", q, q * (1.0 / math.sqrt(D)), precision=P)
        w = jnp.where(mask[:, None, :] == 0, _MASK_FILL, w)
        a = _softmax_last(w)
        ctx = jnp.einsum("bqk,bkd->bqd", a, q, precision=P)
        attn_out = jnp.einsum("bsd,de->bse", ctx, p["wo"], precision=P) + p["bo"]
        x2 = x + attn_out
        x2n = _layernorm(x2, p["ln2_g"], p["ln2_b"])
        h = jnp.maximum(jnp.einsum("bsd,df->bsf", x2n, p["w1"], precision=P) + p["b1"], 0.0)
        ff = jnp.einsum("bsf,fd->bsd", h, p["w2"], precision=P) + p["b2"]
        return x2 + ff, a

    x1, a1 = block(x, params["block1"])
    x2, a2 = block(x1, params["block2"])
    logits = (jnp.einsum("bd,dc->bc", x2[:, 0, :], params["w_head"], precision=P)
              + params["b_head"])
    return logits, a1, a2


if __name__ == "__main__":
    VOCAB, D_MODEL, D_FF, OUT_DIM = 64, 128, 256, 2
    BATCH, SEQ = 2, 8   # max_seq_len == SEQ (the module's pe broadcast requires it)

    key = jax.random.PRNGKey(0)
    k_emb, k_ids, k_b1, k_b2, k_hw, k_hb = jax.random.split(key, 6)

    def linear(k, fan_in, fan_out, std=0.05):
        kw, kb = jax.random.split(k)
        return (std * jax.random.normal(kw, (fan_in, fan_out), jnp.float32),
                0.02 * jax.random.normal(kb, (1, fan_out), jnp.float32))

    def block_params(k):
        kq, ko, k1, k2, kg1, kb1, kg2, kb2 = jax.random.split(k, 8)
        wq, bq = linear(kq, D_MODEL, D_MODEL)
        wo, bo = linear(ko, D_MODEL, D_MODEL)
        w1, b1 = linear(k1, D_MODEL, D_FF)
        w2, b2 = linear(k2, D_FF, D_MODEL)
        return dict(
            ln1_g=1.0 + 0.1 * jax.random.normal(kg1, (1, D_MODEL), jnp.float32),
            ln1_b=0.1 * jax.random.normal(kb1, (1, D_MODEL), jnp.float32),
            ln2_g=1.0 + 0.1 * jax.random.normal(kg2, (1, D_MODEL), jnp.float32),
            ln2_b=0.1 * jax.random.normal(kb2, (1, D_MODEL), jnp.float32),
            wq=wq, bq=bq, wo=wo, bo=bo, w1=w1, b1=b1, w2=w2, b2=b2)

    params = dict(
        emb=jax.random.normal(k_emb, (VOCAB, D_MODEL), jnp.float32),  # frozen table
        block1=block_params(k_b1),
        block2=block_params(k_b2),
        w_head=0.02 * jax.random.normal(k_hw, (D_MODEL, OUT_DIM), jnp.float32),
        b_head=0.02 * jax.random.normal(k_hb, (1, OUT_DIM), jnp.float32),
    )

    # Positional encoding — exact replica of the PyTorch double loop.
    pe_np = np.zeros((SEQ, D_MODEL), dtype=np.float64)
    for pos in range(SEQ):
        for i in range(0, D_MODEL, 2):
            pe_np[pos, i] = math.sin(pos / 10000 ** (2 * i / D_MODEL))
            pe_np[pos, i + 1] = math.cos(pos / 10000 ** (2 * (i + 1) / D_MODEL))
    pe = jnp.asarray(pe_np, dtype=jnp.float32)

    token_ids = jax.random.randint(k_ids, (BATCH, SEQ), 0, VOCAB, dtype=jnp.int32)
    # key-padding mask: 1 = valid token, 0 = pad (as in the IMDB tutorial usage)
    mask = (jnp.arange(SEQ)[None, :] < jnp.array([[SEQ], [SEQ - 3]])).astype(jnp.int32)

    fwd = jax.jit(transformer_classification_forward)
    logits, attn1, attn2 = fwd(token_ids, mask, params, pe)
    jax.block_until_ready((logits, attn1, attn2))

    ref_logits, ref_a1, ref_a2 = reference_forward(token_ids, mask, params, pe)

    assert logits.shape == (BATCH, OUT_DIM)
    assert attn1.shape == (BATCH, SEQ, SEQ)
    assert attn2.shape == (BATCH, SEQ, SEQ)
    # Tolerance sized for the hardware-default (reduced-precision bf16-pass) f32
    # MXU path in the kernel vs. the HIGHEST-precision reference; in practice
    # agreement is much tighter.  The embedding gather itself stays exact.
    TOL = dict(rtol=2e-2, atol=2e-2)
    assert bool(jnp.allclose(logits, ref_logits, **TOL))
    assert bool(jnp.allclose(attn1, ref_a1, **TOL))
    assert bool(jnp.allclose(attn2, ref_a2, **TOL))

    print("KERNEL_OK")
</pallas_src>

<mosaic_0001>
module attributes {stable_mosaic.version = 11 : i64} {
  func.func @_forward_kernel(%arg0: memref<16x1xi32, #tpu.memory_space<vmem>>, %arg1: memref<64x128xf32, #tpu.memory_space<vmem>>, %arg2: memref<8x128xf32, #tpu.memory_space<vmem>>, %arg3: memref<2x8xi32, #tpu.memory_space<vmem>>, %arg4: memref<1x128xf32, #tpu.memory_space<vmem>>, %arg5: memref<1x128xf32, #tpu.memory_space<vmem>>, %arg6: memref<128x128xf32, #tpu.memory_space<vmem>>, %arg7: memref<1x128xf32, #tpu.memory_space<vmem>>, %arg8: memref<128x128xf32, #tpu.memory_space<vmem>>, %arg9: memref<1x128xf32, #tpu.memory_space<vmem>>, %arg10: memref<1x128xf32, #tpu.memory_space<vmem>>, %arg11: memref<1x128xf32, #tpu.memory_space<vmem>>, %arg12: memref<128x256xf32, #tpu.memory_space<vmem>>, %arg13: memref<1x256xf32, #tpu.memory_space<vmem>>, %arg14: memref<256x128xf32, #tpu.memory_space<vmem>>, %arg15: memref<1x128xf32, #tpu.memory_space<vmem>>, %arg16: memref<1x128xf32, #tpu.memory_space<vmem>>, %arg17: memref<1x128xf32, #tpu.memory_space<vmem>>, %arg18: memref<128x128xf32, #tpu.memory_space<vmem>>, %arg19: memref<1x128xf32, #tpu.memory_space<vmem>>, %arg20: memref<128x128xf32, #tpu.memory_space<vmem>>, %arg21: memref<1x128xf32, #tpu.memory_space<vmem>>, %arg22: memref<1x128xf32, #tpu.memory_space<vmem>>, %arg23: memref<1x128xf32, #tpu.memory_space<vmem>>, %arg24: memref<128x256xf32, #tpu.memory_space<vmem>>, %arg25: memref<1x256xf32, #tpu.memory_space<vmem>>, %arg26: memref<256x128xf32, #tpu.memory_space<vmem>>, %arg27: memref<1x128xf32, #tpu.memory_space<vmem>>, %arg28: memref<128x2xf32, #tpu.memory_space<vmem>>, %arg29: memref<1x2xf32, #tpu.memory_space<vmem>>, %arg30: memref<2x2xf32, #tpu.memory_space<vmem>>, %arg31: memref<2x8x8xf32, #tpu.memory_space<vmem>>, %arg32: memref<2x8x8xf32, #tpu.memory_space<vmem>>) attributes {dimension_semantics = [], scalar_prefetch = 0 : i64, scratch_operands = 0 : i64, tpu.core_type = #tpu.core_type<tc>} {
    %c0 = arith.constant 0 : index
    %c0_0 = arith.constant 0 : index
    %0 = vector.load %arg0[%c0, %c0_0] : memref<16x1xi32, #tpu.memory_space<vmem>>, vector<16x1xi32>
    %1 = tpu.iota {dimensions = array<i32: 1>} : vector<16x64xi32>
    %2 = vector.broadcast %0 : vector<16x1xi32> to vector<16x64xi32>
    %3 = arith.cmpi eq, %1, %2 : vector<16x64xi32>
    %4 = arith.extui %3 : vector<16x64xi1> to vector<16x64xi32>
    %5 = arith.sitofp %4 : vector<16x64xi32> to vector<16x64xf32>
    %c0_1 = arith.constant 0 : index
    %c0_2 = arith.constant 0 : index
    %6 = vector.load %arg1[%c0_1, %c0_2] : memref<64x128xf32, #tpu.memory_space<vmem>>, vector<64x128xf32>
    %cst = arith.constant dense<0.000000e+00> : vector<16x128xf32>
    %7 = tpu.matmul %5, %6, %cst {dimension_numbers = #tpu.dot_dimension_numbers<[1], [0], [0], [1], [0, 0, 1, 1], [], []>, precision = #tpu.contract_precision<fp32>} : vector<16x64xf32>, vector<64x128xf32>, vector<16x128xf32> -> vector<16x128xf32>
    %c0_3 = arith.constant 0 : index
    %c0_4 = arith.constant 0 : index
    %8 = vector.load %arg2[%c0_3, %c0_4] : memref<8x128xf32, #tpu.memory_space<vmem>>, vector<8x128xf32>
    %9 = vector.shape_cast %8 : vector<8x128xf32> to vector<1x8x128xf32>
    %10 = vector.shape_cast %9 : vector<1x8x128xf32> to vector<1x8x128xf32>
    %11 = vector.broadcast %10 : vector<1x8x128xf32> to vector<2x8x128xf32>
    %12 = vector.shape_cast %11 : vector<2x8x128xf32> to vector<16x128xf32>
    %cst_5 = arith.constant 11.3137083 : f32
    %13 = vector.broadcast %cst_5 : f32 to vector<16x128xf32>
    %14 = arith.mulf %13, %7 : vector<16x128xf32>
    %15 = arith.addf %14, %12 : vector<16x128xf32>
    %c0_6 = arith.constant 0 : index
    %c0_7 = arith.constant 0 : index
    %16 = vector.load %arg3[%c0_6, %c0_7] : memref<2x8xi32, #tpu.memory_space<vmem>>, vector<2x8xi32>
    %c0_i32 = arith.constant 0 : i32
    %17 = vector.broadcast %c0_i32 : i32 to vector<2x8xi32>
    %18 = arith.cmpi eq, %16, %17 : vector<2x8xi32>
    %19 = vector.shape_cast %18 : vector<2x8xi1> to vector<2x1x8xi1>
    %c0_8 = arith.constant 0 : index
    %c0_9 = arith.constant 0 : index
    %20 = vector.load %arg4[%c0_8, %c0_9] : memref<1x128xf32, #tpu.memory_space<vmem>>, vector<1x128xf32>
    %c0_10 = arith.constant 0 : index
    %c0_11 = arith.constant 0 : index
    %21 = vector.load %arg5[%c0_10, %c0_11] : memref<1x128xf32, #tpu.memory_space<vmem>>, vector<1x128xf32>
    %cst_12 = arith.constant dense<0.000000e+00> : vector<16xf32>
    %22 = vector.multi_reduction <add>, %15, %cst_12 [1] : vector<16x128xf32> to vector<16xf32>
    %23 = vector.shape_cast %22 : vector<16xf32> to vector<16x1xf32>
    %cst_13 = arith.constant 1.280000e+02 : f32
    %24 = vector.broadcast %cst_13 : f32 to vector<16x1xf32>
    %25 = arith.divf %23, %24 : vector<16x1xf32>
    %26 = vector.broadcast %25 : vector<16x1xf32> to vector<16x128xf32>
    %27 = arith.subf %15, %26 : vector<16x128xf32>
    %28 = arith.mulf %27, %27 : vector<16x128xf32>
    %cst_14 = arith.constant dense<0.000000e+00> : vector<16xf32>
    %29 = vector.multi_reduction <add>, %28, %cst_14 [1] : vector<16x128xf32> to vector<16xf32>
    %30 = vector.shape_cast %29 : vector<16xf32> to vector<16x1xf32>
    %cst_15 = arith.constant 1.280000e+02 : f32
    %31 = vector.broadcast %cst_15 : f32 to vector<16x1xf32>
    %32 = arith.divf %30, %31 : vector<16x1xf32>
    %33 = vector.broadcast %25 : vector<16x1xf32> to vector<16x128xf32>
    %34 = arith.subf %15, %33 : vector<16x128xf32>
    %cst_16 = arith.constant 9.99999974E-6 : f32
    %35 = vector.broadcast %cst_16 : f32 to vector<16x1xf32>
    %36 = arith.addf %32, %35 : vector<16x1xf32>
    %37 = math.rsqrt %36 : vector<16x1xf32>
    %38 = vector.broadcast %37 : vector<16x1xf32> to vector<16x128xf32>
    %39 = arith.mulf %34, %38 : vector<16x128xf32>
    %40 = vector.broadcast %20 : vector<1x128xf32> to vector<16x128xf32>
    %41 = arith.mulf %39, %40 : vector<16x128xf32>
    %42 = vector.broadcast %21 : vector<1x128xf32> to vector<16x128xf32>
    %43 = arith.addf %41, %42 : vector<16x128xf32>
    %c0_17 = arith.constant 0 : index
    %c0_18 = arith.constant 0 : index
    %44 = vector.load %arg6[%c0_17, %c0_18] : memref<128x128xf32, #tpu.memory_space<vmem>>, vector<128x128xf32>
    %cst_19 = arith.constant dense<0.000000e+00> : vector<16x128xf32>
    %45 = tpu.matmul %43, %44, %cst_19 {dimension_numbers = #tpu.dot_dimension_numbers<[1], [0], [0], [1], [0, 0, 1, 1], [], []>} : vector<16x128xf32>, vector<128x128xf32>, vector<16x128xf32> -> vector<16x128xf32>
    %c0_20 = arith.constant 0 : index
    %c0_21 = arith.constant 0 : index
    %46 = vector.load %arg7[%c0_20, %c0_21] : memref<1x128xf32, #tpu.memory_space<vmem>>, vector<1x128xf32>
    %47 = vector.broadcast %46 : vector<1x128xf32> to vector<16x128xf32>
    %48 = arith.addf %45, %47 : vector<16x128xf32>
    %49 = vector.shape_cast %48 : vector<16x128xf32> to vector<2x8x128xf32>
    %cst_22 = arith.constant 0.0883883461 : f32
    %50 = vector.broadcast %cst_22 : f32 to vector<2x8x128xf32>
    %51 = arith.mulf %49, %50 : vector<2x8x128xf32>
    "tpu.trace_start"() <{level = 10 : i32, message = "bqd,bkd->bqk"}> : () -> ()
    %cst_23 = arith.constant dense<0.000000e+00> : vector<2x8x8xf32>
    %52 = tpu.matmul %49, %51, %cst_23 {dimension_numbers = #tpu.dot_dimension_numbers<[2], [2], [1], [1], [0, 0, 0, 1, 1, 1], [0], [0]>} : vector<2x8x128xf32>, vector<2x8x128xf32>, vector<2x8x8xf32> -> vector<2x8x8xf32>
    %cst_24 = arith.constant -1.000000e+09 : f32
    "tpu.trace_stop"() : () -> ()
    %53 = vector.shape_cast %19 : vector<2x1x8xi1> to vector<2x1x8xi1>
    %54 = vector.broadcast %53 : vector<2x1x8xi1> to vector<2x8x8xi1>
    %55 = vector.broadcast %cst_24 : f32 to vector<2x8x8xf32>
    %56 = arith.select %54, %55, %52 : vector<2x8x8xi1>, vector<2x8x8xf32>
    %cst_25 = arith.constant dense<0xFF800000> : vector<2x8xf32>
    %57 = vector.multi_reduction <maximumf>, %56, %cst_25 [2] : vector<2x8x8xf32> to vector<2x8xf32>
    %58 = vector.shape_cast %57 : vector<2x8xf32> to vector<2x8x1xf32>
    %59 = vector.broadcast %58 : vector<2x8x1xf32> to vector<2x8x8xf32>
    %60 = arith.subf %56, %59 : vector<2x8x8xf32>
    %61 = math.exp %60 : vector<2x8x8xf32>
    %cst_26 = arith.constant dense<0.000000e+00> : vector<2x8xf32>
    %62 = vector.multi_reduction <add>, %61, %cst_26 [2] : vector<2x8x8xf32> to vector<2x8xf32>
    %63 = vector.shape_cast %62 : vector<2x8xf32> to vector<2x8x1xf32>
    %64 = tpu.reciprocal %63 {approx = true} : vector<2x8x1xf32> -> vector<2x8x1xf32>
    %65 = vector.broadcast %64 : vector<2x8x1xf32> to vector<2x8x8xf32>
    %66 = arith.mulf %61, %65 : vector<2x8x8xf32>
    "tpu.trace_start"() <{level = 10 : i32, message = "bqk,bkd->bqd"}> : () -> ()
    %cst_27 = arith.constant dense<0.000000e+00> : vector<2x8x128xf32>
    %67 = tpu.matmul %66, %49, %cst_27 {dimension_numbers = #tpu.dot_dimension_numbers<[2], [1], [1], [2], [0, 0, 0, 1, 1, 2], [0], [0]>} : vector<2x8x8xf32>, vector<2x8x128xf32>, vector<2x8x128xf32> -> vector<2x8x128xf32>
    "tpu.trace_stop"() : () -> ()
    %68 = vector.shape_cast %67 : vector<2x8x128xf32> to vector<16x128xf32>
    %c0_28 = arith.constant 0 : index
    %c0_29 = arith.constant 0 : index
    %69 = vector.load %arg8[%c0_28, %c0_29] : memref<128x128xf32, #tpu.memory_space<vmem>>, vector<128x128xf32>
    %cst_30 = arith.constant dense<0.000000e+00> : vector<16x128xf32>
    %70 = tpu.matmul %68, %69, %cst_30 {dimension_numbers = #tpu.dot_dimension_numbers<[1], [0], [0], [1], [0, 0, 1, 1], [], []>} : vector<16x128xf32>, vector<128x128xf32>, vector<16x128xf32> -> vector<16x128xf32>
    %c0_31 = arith.constant 0 : index
    %c0_32 = arith.constant 0 : index
    %71 = vector.load %arg9[%c0_31, %c0_32] : memref<1x128xf32, #tpu.memory_space<vmem>>, vector<1x128xf32>
    %72 = vector.broadcast %71 : vector<1x128xf32> to vector<16x128xf32>
    %73 = arith.addf %70, %72 : vector<16x128xf32>
    %74 = arith.addf %15, %73 : vector<16x128xf32>
    %c0_33 = arith.constant 0 : index
    %c0_34 = arith.constant 0 : index
    %75 = vector.load %arg10[%c0_33, %c0_34] : memref<1x128xf32, #tpu.memory_space<vmem>>, vector<1x128xf32>
    %c0_35 = arith.constant 0 : index
    %c0_36 = arith.constant 0 : index
    %76 = vector.load %arg11[%c0_35, %c0_36] : memref<1x128xf32, #tpu.memory_space<vmem>>, vector<1x128xf32>
    %cst_37 = arith.constant dense<0.000000e+00> : vector<16xf32>
    %77 = vector.multi_reduction <add>, %74, %cst_37 [1] : vector<16x128xf32> to vector<16xf32>
    %78 = vector.shape_cast %77 : vector<16xf32> to vector<16x1xf32>
    %cst_38 = arith.constant 1.280000e+02 : f32
    %79 = vector.broadcast %cst_38 : f32 to vector<16x1xf32>
    %80 = arith.divf %78, %79 : vector<16x1xf32>
    %81 = vector.broadcast %80 : vector<16x1xf32> to vector<16x128xf32>
    %82 = arith.subf %74, %81 : vector<16x128xf32>
    %83 = arith.mulf %82, %82 : vector<16x128xf32>
    %cst_39 = arith.constant dense<0.000000e+00> : vector<16xf32>
    %84 = vector.multi_reduction <add>, %83, %cst_39 [1] : vector<16x128xf32> to vector<16xf32>
    %85 = vector.shape_cast %84 : vector<16xf32> to vector<16x1xf32>
    %cst_40 = arith.constant 1.280000e+02 : f32
    %86 = vector.broadcast %cst_40 : f32 to vector<16x1xf32>
    %87 = arith.divf %85, %86 : vector<16x1xf32>
    %88 = vector.broadcast %80 : vector<16x1xf32> to vector<16x128xf32>
    %89 = arith.subf %74, %88 : vector<16x128xf32>
    %cst_41 = arith.constant 9.99999974E-6 : f32
    %90 = vector.broadcast %cst_41 : f32 to vector<16x1xf32>
    %91 = arith.addf %87, %90 : vector<16x1xf32>
    %92 = math.rsqrt %91 : vector<16x1xf32>
    %93 = vector.broadcast %92 : vector<16x1xf32> to vector<16x128xf32>
    %94 = arith.mulf %89, %93 : vector<16x128xf32>
    %95 = vector.broadcast %75 : vector<1x128xf32> to vector<16x128xf32>
    %96 = arith.mulf %94, %95 : vector<16x128xf32>
    %97 = vector.broadcast %76 : vector<1x128xf32> to vector<16x128xf32>
    %98 = arith.addf %96, %97 : vector<16x128xf32>
    %c0_42 = arith.constant 0 : index
    %c0_43 = arith.constant 0 : index
    %99 = vector.load %arg12[%c0_42, %c0_43] : memref<128x256xf32, #tpu.memory_space<vmem>>, vector<128x256xf32>
    %cst_44 = arith.constant dense<0.000000e+00> : vector<16x256xf32>
    %100 = tpu.matmul %98, %99, %cst_44 {dimension_numbers = #tpu.dot_dimension_numbers<[1], [0], [0], [1], [0, 0, 1, 1], [], []>} : vector<16x128xf32>, vector<128x256xf32>, vector<16x256xf32> -> vector<16x256xf32>
    %c0_45 = arith.constant 0 : index
    %c0_46 = arith.constant 0 : index
    %101 = vector.load %arg13[%c0_45, %c0_46] : memref<1x256xf32, #tpu.memory_space<vmem>>, vector<1x256xf32>
    %102 = vector.broadcast %101 : vector<1x256xf32> to vector<16x256xf32>
    %103 = arith.addf %100, %102 : vector<16x256xf32>
    %cst_47 = arith.constant 0.000000e+00 : f32
    %104 = vector.broadcast %cst_47 : f32 to vector<16x256xf32>
    %105 = arith.maximumf %103, %104 : vector<16x256xf32>
    %c0_48 = arith.constant 0 : index
    %c0_49 = arith.constant 0 : index
    %106 = vector.load %arg14[%c0_48, %c0_49] : memref<256x128xf32, #tpu.memory_space<vmem>>, vector<256x128xf32>
    %cst_50 = arith.constant dense<0.000000e+00> : vector<16x128xf32>
    %107 = tpu.matmul %105, %106, %cst_50 {dimension_numbers = #tpu.dot_dimension_numbers<[1], [0], [0], [1], [0, 0, 1, 1], [], []>} : vector<16x256xf32>, vector<256x128xf32>, vector<16x128xf32> -> vector<16x128xf32>
    %c0_51 = arith.constant 0 : index
    %c0_52 = arith.constant 0 : index
    %108 = vector.load %arg15[%c0_51, %c0_52] : memref<1x128xf32, #tpu.memory_space<vmem>>, vector<1x128xf32>
    %109 = vector.broadcast %108 : vector<1x128xf32> to vector<16x128xf32>
    %110 = arith.addf %107, %109 : vector<16x128xf32>
    %111 = arith.addf %74, %110 : vector<16x128xf32>
    %c0_53 = arith.constant 0 : index
    %c0_54 = arith.constant 0 : index
    %112 = vector.load %arg16[%c0_53, %c0_54] : memref<1x128xf32, #tpu.memory_space<vmem>>, vector<1x128xf32>
    %c0_55 = arith.constant 0 : index
    %c0_56 = arith.constant 0 : index
    %113 = vector.load %arg17[%c0_55, %c0_56] : memref<1x128xf32, #tpu.memory_space<vmem>>, vector<1x128xf32>
    %cst_57 = arith.constant dense<0.000000e+00> : vector<16xf32>
    %114 = vector.multi_reduction <add>, %111, %cst_57 [1] : vector<16x128xf32> to vector<16xf32>
    %115 = vector.shape_cast %114 : vector<16xf32> to vector<16x1xf32>
    %cst_58 = arith.constant 1.280000e+02 : f32
    %116 = vector.broadcast %cst_58 : f32 to vector<16x1xf32>
    %117 = arith.divf %115, %116 : vector<16x1xf32>
    %118 = vector.broadcast %117 : vector<16x1xf32> to vector<16x128xf32>
    %119 = arith.subf %111, %118 : vector<16x128xf32>
    %120 = arith.mulf %119, %119 : vector<16x128xf32>
    %cst_59 = arith.constant dense<0.000000e+00> : vector<16xf32>
    %121 = vector.multi_reduction <add>, %120, %cst_59 [1] : vector<16x128xf32> to vector<16xf32>
    %122 = vector.shape_cast %121 : vector<16xf32> to vector<16x1xf32>
    %cst_60 = arith.constant 1.280000e+02 : f32
    %123 = vector.broadcast %cst_60 : f32 to vector<16x1xf32>
    %124 = arith.divf %122, %123 : vector<16x1xf32>
    %125 = vector.broadcast %117 : vector<16x1xf32> to vector<16x128xf32>
    %126 = arith.subf %111, %125 : vector<16x128xf32>
    %cst_61 = arith.constant 9.99999974E-6 : f32
    %127 = vector.broadcast %cst_61 : f32 to vector<16x1xf32>
    %128 = arith.addf %124, %127 : vector<16x1xf32>
    %129 = math.rsqrt %128 : vector<16x1xf32>
    %130 = vector.broadcast %129 : vector<16x1xf32> to vector<16x128xf32>
    %131 = arith.mulf %126, %130 : vector<16x128xf32>
    %132 = vector.broadcast %112 : vector<1x128xf32> to vector<16x128xf32>
    %133 = arith.mulf %131, %132 : vector<16x128xf32>
    %134 = vector.broadcast %113 : vector<1x128xf32> to vector<16x128xf32>
    %135 = arith.addf %133, %134 : vector<16x128xf32>
    %c0_62 = arith.constant 0 : index
    %c0_63 = arith.constant 0 : index
    %136 = vector.load %arg18[%c0_62, %c0_63] : memref<128x128xf32, #tpu.memory_space<vmem>>, vector<128x128xf32>
    %cst_64 = arith.constant dense<0.000000e+00> : vector<16x128xf32>
    %137 = tpu.matmul %135, %136, %cst_64 {dimension_numbers = #tpu.dot_dimension_numbers<[1], [0], [0], [1], [0, 0, 1, 1], [], []>} : vector<16x128xf32>, vector<128x128xf32>, vector<16x128xf32> -> vector<16x128xf32>
    %c0_65 = arith.constant 0 : index
    %c0_66 = arith.constant 0 : index
    %138 = vector.load %arg19[%c0_65, %c0_66] : memref<1x128xf32, #tpu.memory_space<vmem>>, vector<1x128xf32>
    %139 = vector.broadcast %138 : vector<1x128xf32> to vector<16x128xf32>
    %140 = arith.addf %137, %139 : vector<16x128xf32>
    %141 = vector.shape_cast %140 : vector<16x128xf32> to vector<2x8x128xf32>
    %cst_67 = arith.constant 0.0883883461 : f32
    %142 = vector.broadcast %cst_67 : f32 to vector<2x8x128xf32>
    %143 = arith.mulf %141, %142 : vector<2x8x128xf32>
    "tpu.trace_start"() <{level = 10 : i32, message = "bqd,bkd->bqk"}> : () -> ()
    %cst_68 = arith.constant dense<0.000000e+00> : vector<2x8x8xf32>
    %144 = tpu.matmul %141, %143, %cst_68 {dimension_numbers = #tpu.dot_dimension_numbers<[2], [2], [1], [1], [0, 0, 0, 1, 1, 1], [0], [0]>} : vector<2x8x128xf32>, vector<2x8x128xf32>, vector<2x8x8xf32> -> vector<2x8x8xf32>
    %cst_69 = arith.constant -1.000000e+09 : f32
    "tpu.trace_stop"() : () -> ()
    %145 = vector.shape_cast %19 : vector<2x1x8xi1> to vector<2x1x8xi1>
    %146 = vector.broadcast %145 : vector<2x1x8xi1> to vector<2x8x8xi1>
    %147 = vector.broadcast %cst_69 : f32 to vector<2x8x8xf32>
    %148 = arith.select %146, %147, %144 : vector<2x8x8xi1>, vector<2x8x8xf32>
    %cst_70 = arith.constant dense<0xFF800000> : vector<2x8xf32>
    %149 = vector.multi_reduction <maximumf>, %148, %cst_70 [2] : vector<2x8x8xf32> to vector<2x8xf32>
    %150 = vector.shape_cast %149 : vector<2x8xf32> to vector<2x8x1xf32>
    %151 = vector.broadcast %150 : vector<2x8x1xf32> to vector<2x8x8xf32>
    %152 = arith.subf %148, %151 : vector<2x8x8xf32>
    %153 = math.exp %152 : vector<2x8x8xf32>
    %cst_71 = arith.constant dense<0.000000e+00> : vector<2x8xf32>
    %154 = vector.multi_reduction <add>, %153, %cst_71 [2] : vector<2x8x8xf32> to vector<2x8xf32>
    %155 = vector.shape_cast %154 : vector<2x8xf32> to vector<2x8x1xf32>
    %156 = tpu.reciprocal %155 {approx = true} : vector<2x8x1xf32> -> vector<2x8x1xf32>
    %157 = vector.broadcast %156 : vector<2x8x1xf32> to vector<2x8x8xf32>
    %158 = arith.mulf %153, %157 : vector<2x8x8xf32>
    "tpu.trace_start"() <{level = 10 : i32, message = "bqk,bkd->bqd"}> : () -> ()
    %cst_72 = arith.constant dense<0.000000e+00> : vector<2x8x128xf32>
    %159 = tpu.matmul %158, %141, %cst_72 {dimension_numbers = #tpu.dot_dimension_numbers<[2], [1], [1], [2], [0, 0, 0, 1, 1, 2], [0], [0]>} : vector<2x8x8xf32>, vector<2x8x128xf32>, vector<2x8x128xf32> -> vector<2x8x128xf32>
    "tpu.trace_stop"() : () -> ()
    %160 = vector.shape_cast %159 : vector<2x8x128xf32> to vector<16x128xf32>
    %c0_73 = arith.constant 0 : index
    %c0_74 = arith.constant 0 : index
    %161 = vector.load %arg20[%c0_73, %c0_74] : memref<128x128xf32, #tpu.memory_space<vmem>>, vector<128x128xf32>
    %cst_75 = arith.constant dense<0.000000e+00> : vector<16x128xf32>
    %162 = tpu.matmul %160, %161, %cst_75 {dimension_numbers = #tpu.dot_dimension_numbers<[1], [0], [0], [1], [0, 0, 1, 1], [], []>} : vector<16x128xf32>, vector<128x128xf32>, vector<16x128xf32> -> vector<16x128xf32>
    %c0_76 = arith.constant 0 : index
    %c0_77 = arith.constant 0 : index
    %163 = vector.load %arg21[%c0_76, %c0_77] : memref<1x128xf32, #tpu.memory_space<vmem>>, vector<1x128xf32>
    %164 = vector.broadcast %163 : vector<1x128xf32> to vector<16x128xf32>
    %165 = arith.addf %162, %164 : vector<16x128xf32>
    %166 = arith.addf %111, %165 : vector<16x128xf32>
    %c0_78 = arith.constant 0 : index
    %c0_79 = arith.constant 0 : index
    %167 = vector.load %arg22[%c0_78, %c0_79] : memref<1x128xf32, #tpu.memory_space<vmem>>, vector<1x128xf32>
    %c0_80 = arith.constant 0 : index
    %c0_81 = arith.constant 0 : index
    %168 = vector.load %arg23[%c0_80, %c0_81] : memref<1x128xf32, #tpu.memory_space<vmem>>, vector<1x128xf32>
    %cst_82 = arith.constant dense<0.000000e+00> : vector<16xf32>
    %169 = vector.multi_reduction <add>, %166, %cst_82 [1] : vector<16x128xf32> to vector<16xf32>
    %170 = vector.shape_cast %169 : vector<16xf32> to vector<16x1xf32>
    %cst_83 = arith.constant 1.280000e+02 : f32
    %171 = vector.broadcast %cst_83 : f32 to vector<16x1xf32>
    %172 = arith.divf %170, %171 : vector<16x1xf32>
    %173 = vector.broadcast %172 : vector<16x1xf32> to vector<16x128xf32>
    %174 = arith.subf %166, %173 : vector<16x128xf32>
    %175 = arith.mulf %174, %174 : vector<16x128xf32>
    %cst_84 = arith.constant dense<0.000000e+00> : vector<16xf32>
    %176 = vector.multi_reduction <add>, %175, %cst_84 [1] : vector<16x128xf32> to vector<16xf32>
    %177 = vector.shape_cast %176 : vector<16xf32> to vector<16x1xf32>
    %cst_85 = arith.constant 1.280000e+02 : f32
    %178 = vector.broadcast %cst_85 : f32 to vector<16x1xf32>
    %179 = arith.divf %177, %178 : vector<16x1xf32>
    %180 = vector.broadcast %172 : vector<16x1xf32> to vector<16x128xf32>
    %181 = arith.subf %166, %180 : vector<16x128xf32>
    %cst_86 = arith.constant 9.99999974E-6 : f32
    %182 = vector.broadcast %cst_86 : f32 to vector<16x1xf32>
    %183 = arith.addf %179, %182 : vector<16x1xf32>
    %184 = math.rsqrt %183 : vector<16x1xf32>
    %185 = vector.broadcast %184 : vector<16x1xf32> to vector<16x128xf32>
    %186 = arith.mulf %181, %185 : vector<16x128xf32>
    %187 = vector.broadcast %167 : vector<1x128xf32> to vector<16x128xf32>
    %188 = arith.mulf %186, %187 : vector<16x128xf32>
    %189 = vector.broadcast %168 : vector<1x128xf32> to vector<16x128xf32>
    %190 = arith.addf %188, %189 : vector<16x128xf32>
    %c0_87 = arith.constant 0 : index
    %c0_88 = arith.constant 0 : index
    %191 = vector.load %arg24[%c0_87, %c0_88] : memref<128x256xf32, #tpu.memory_space<vmem>>, vector<128x256xf32>
    %cst_89 = arith.constant dense<0.000000e+00> : vector<16x256xf32>
    %192 = tpu.matmul %190, %191, %cst_89 {dimension_numbers = #tpu.dot_dimension_numbers<[1], [0], [0], [1], [0, 0, 1, 1], [], []>} : vector<16x128xf32>, vector<128x256xf32>, vector<16x256xf32> -> vector<16x256xf32>
    %c0_90 = arith.constant 0 : index
    %c0_91 = arith.constant 0 : index
    %193 = vector.load %arg25[%c0_90, %c0_91] : memref<1x256xf32, #tpu.memory_space<vmem>>, vector<1x256xf32>
    %194 = vector.broadcast %193 : vector<1x256xf32> to vector<16x256xf32>
    %195 = arith.addf %192, %194 : vector<16x256xf32>
    %cst_92 = arith.constant 0.000000e+00 : f32
    %196 = vector.broadcast %cst_92 : f32 to vector<16x256xf32>
    %197 = arith.maximumf %195, %196 : vector<16x256xf32>
    %c0_93 = arith.constant 0 : index
    %c0_94 = arith.constant 0 : index
    %198 = vector.load %arg26[%c0_93, %c0_94] : memref<256x128xf32, #tpu.memory_space<vmem>>, vector<256x128xf32>
    %cst_95 = arith.constant dense<0.000000e+00> : vector<16x128xf32>
    %199 = tpu.matmul %197, %198, %cst_95 {dimension_numbers = #tpu.dot_dimension_numbers<[1], [0], [0], [1], [0, 0, 1, 1], [], []>} : vector<16x256xf32>, vector<256x128xf32>, vector<16x128xf32> -> vector<16x128xf32>
    %c0_96 = arith.constant 0 : index
    %c0_97 = arith.constant 0 : index
    %200 = vector.load %arg27[%c0_96, %c0_97] : memref<1x128xf32, #tpu.memory_space<vmem>>, vector<1x128xf32>
    %201 = vector.broadcast %200 : vector<1x128xf32> to vector<16x128xf32>
    %202 = arith.addf %199, %201 : vector<16x128xf32>
    %203 = arith.addf %166, %202 : vector<16x128xf32>
    %204 = vector.shape_cast %203 : vector<16x128xf32> to vector<2x8x128xf32>
    %205 = vector.extract_strided_slice %204 {offsets = [0, 0, 0], sizes = [2, 1, 128], strides = [1, 1, 1]} : vector<2x8x128xf32> to vector<2x1x128xf32>
    %206 = vector.shape_cast %205 : vector<2x1x128xf32> to vector<2x128xf32>
    %c0_98 = arith.constant 0 : index
    %c0_99 = arith.constant 0 : index
    %207 = vector.load %arg28[%c0_98, %c0_99] : memref<128x2xf32, #tpu.memory_space<vmem>>, vector<128x2xf32>
    %cst_100 = arith.constant dense<0.000000e+00> : vector<2x2xf32>
    %208 = tpu.matmul %206, %207, %cst_100 {dimension_numbers = #tpu.dot_dimension_numbers<[1], [0], [0], [1], [0, 0, 1, 1], [], []>} : vector<2x128xf32>, vector<128x2xf32>, vector<2x2xf32> -> vector<2x2xf32>
    %c0_101 = arith.constant 0 : index
    %c0_102 = arith.constant 0 : index
    %209 = vector.load %arg29[%c0_101, %c0_102] : memref<1x2xf32, #tpu.memory_space<vmem>>, vector<1x2xf32>
    %210 = vector.broadcast %209 : vector<1x2xf32> to vector<2x2xf32>
    %211 = arith.addf %208, %210 : vector<2x2xf32>
    %c0_103 = arith.constant 0 : index
    %c0_104 = arith.constant 0 : index
    %212 = vector.load %arg30[%c0_103, %c0_104] : memref<2x2xf32, #tpu.memory_space<vmem>>, vector<2x2xf32>
    tpu.vector_store %arg30[%c0_103, %c0_104], %211 {strides = array<i32>} : memref<2x2xf32, #tpu.memory_space<vmem>>, vector<2x2xf32>,
    %c0_105 = arith.constant 0 : index
    %c0_106 = arith.constant 0 : index
    %c0_107 = arith.constant 0 : index
    %213 = vector.load %arg31[%c0_105, %c0_106, %c0_107] : memref<2x8x8xf32, #tpu.memory_space<vmem>>, vector<2x8x8xf32>
    tpu.vector_store %arg31[%c0_105, %c0_106, %c0_107], %66 {strides = array<i32>} : memref<2x8x8xf32, #tpu.memory_space<vmem>>, vector<2x8x8xf32>,
    %c0_108 = arith.constant 0 : index
    %c0_109 = arith.constant 0 : index
    %c0_110 = arith.constant 0 : index
    %214 = vector.load %arg32[%c0_108, %c0_109, %c0_110] : memref<2x8x8xf32, #tpu.memory_space<vmem>>, vector<2x8x8xf32>
    tpu.vector_store %arg32[%c0_108, %c0_109, %c0_110], %158 {strides = array<i32>} : memref<2x8x8xf32, #tpu.memory_space<vmem>>, vector<2x8x8xf32>,
    return
  }
}

</mosaic_0001>

<bundles_post_ra>
// kernel: transformer_classification_forward.1
= control target key start
LH: loop header
LB: loop body
LE: loop exit
PB: predicated region body
PF: predicated region fallthrough
CT: control target
= control target key end

     0   :  { %s4358_s6 = smov 1   ;;  %s4359_s10 = smov 2   ;;  %s4973_s0 = inlined_call_operand.smem [shape: u32[33], index: -1, kind: input, shape index: {}] }
   0x1   :  { %s4426_s5 = sld [smem:[%s4973_s0]]   ;;  %s4360_s14 = smov 3  }
   0x2   :  { %s4431_s9 = sld [smem:[%s4973_s0 + %s4358_s6]]   ;;  %s4361_s18 = smov 4  }
   0x3   :  { %s4436_s13 = sld [smem:[%s4973_s0 + %s4359_s10]]   ;;  %s4362_s22 = smov 5  }
   0x4   :  { %s4441_s17 = sld [smem:[%s4973_s0 + %s4360_s14]]   ;;  %s4363_s26 = smov 6  }
   0x5   :  { %s4446_s21 = sld [smem:[%s4973_s0 + %s4361_s18]]   ;;  %s4364_s30 = smov 7  }
   0x6   :  { %s4451_s25 = sld [smem:[%s4973_s0 + %s4362_s22]]   ;;  %s4365_s4 = smov 8  }
   0x7   :  { %4979 = sst [smem:[#allocation43_spill]] %s4426_s5  ;;  %s4366_s10 = smov 9  }
   0x8   :  { %4980 = sst [smem:[#allocation44_spill]] %s4431_s9  ;;  %s4367_s15 = smov 10  }
   0x9   :  { %4981 = sst [smem:[#allocation45_spill]] %s4436_s13  ;;  %s4368_s20 = smov 11  }
   0xa   :  { %4982 = sst [smem:[#allocation46_spill]] %s4441_s17  ;;  %s4370_s1 = smov 13  }
   0xb   :  { %s4456_s29 = sld [smem:[%s4973_s0 + %s4363_s26]]   ;;  %s4369_s26 = smov 12  }
   0xc   :  { %s4461_s3 = sld [smem:[%s4973_s0 + %s4364_s30]]   ;;  %s4371_s7 = smov 14  }
   0xd   :  { %s4466_s8 = sld [smem:[%s4973_s0 + %s4365_s4]]   ;;  %s4373_s22 = smov 16  }
   0xe   :  { %s4471_s14 = sld [smem:[%s4973_s0 + %s4366_s10]]   ;;  %s4374_s28 = smov 17  }
   0xf   :  { %s4476_s19 = sld [smem:[%s4973_s0 + %s4367_s15]]   ;;  %s4372_s15 = smov 15  }
  0x10   :  { %s4481_s24 = sld [smem:[%s4973_s0 + %s4368_s20]]  }
  0x11   :  { %4983 = sst [smem:[#allocation47_spill]] %s4456_s29 }
  0x12   :  { %s4486_s30 = sld [smem:[%s4973_s0 + %s4369_s26]]  }
  0x13   :  { %s4491_s6 = sld [smem:[%s4973_s0 + %s4370_s1]]  }
  0x14   :  { %s4496_s12 = sld [smem:[%s4973_s0 + %s4371_s7]]   ;;  %s4375_s7 = smov 18  }
  0x15   :  { %s4501_s20 = sld [smem:[%s4973_s0 + %s4372_s15]]   ;;  %s4376_s15 = smov 19  }
  0x16   :  { %s4506_s27 = sld [smem:[%s4973_s0 + %s4373_s22]]   ;;  %s4377_s22 = smov 20  }
  0x17   :  { %s4511_s4 = sld [smem:[%s4973_s0 + %s4374_s28]]   ;;  %s4378_s28 = smov 21  }
  0x18   :  { %s4521_s17 = sld [smem:[%s4973_s0 + %s4376_s15]]   ;;  %s4380_s15 = smov 23  }
  0x19   :  { %4984 = sst [smem:[#allocation48_spill]] %s4491_s6 }
  0x1a   :  { %s4516_s6 = sld [smem:[%s4973_s0 + %s4375_s7]]   ;;  %s4379_s7 = smov 22  }
  0x1b   :  { %s4536_s29 = sld [smem:[%s4973_s0 + %s4379_s7]]   ;;  %s4383_s7 = smov 26  }
  0x1c   :  { %4985 = sst [smem:[#allocation49_spill]] %s4506_s27 }
  0x1d   :  { %4986 = sst [smem:[#allocation50_spill]] %s4511_s4 }
  0x1e   :  { %4987 = sst [smem:[#allocation51_spill]] %s4521_s17 }
  0x1f   :  { %s4526_s27 = sld [smem:[%s4973_s0 + %s4377_s22]]   ;;  %s4381_s22 = smov 24  }
  0x20   :  { %s4531_s4 = sld [smem:[%s4973_s0 + %s4378_s28]]   ;;  %s4382_s28 = smov 25  }
  0x21   :  { %4989 = sst [smem:[#allocation53_spill]] %s4536_s29 }
  0x22   :  { %s4541_s17 = sld [smem:[%s4973_s0 + %s4380_s15]]   ;;  %s4384_s15 = smov 27  }
  0x23   :  { %s4546_s13 = sld [smem:[%s4973_s0 + %s4381_s22]]   ;;  %s4385_s22 = smov 28  }
  0x24   :  { %s4556_s29 = sld [smem:[%s4973_s0 + %s4383_s7]]   ;;  %s4387_s7 = smov 30  }
  0x25   :  { %s4566_s9 = sld [smem:[%s4973_s0 + %s4385_s22]]   ;;  %s4389_s22 = smov 32  }
  0x26   :  { %4988 = sst [smem:[#allocation52_spill]] %s4531_s4 }
  0x27   :  { %s4551_s4 = sld [smem:[%s4973_s0 + %s4382_s28]]   ;;  %s4386_s28 = smov 29  }
  0x28   :  { %4990 = sst [smem:[#allocation54_spill]] %s4541_s17 }
  0x29   :  { %s4561_s17 = sld [smem:[%s4973_s0 + %s4384_s15]]   ;;  %s4388_s15 = smov 31  }
  0x2a   :  { %s4576_s5 = sld [smem:[%s4973_s0 + %s4387_s7]]  }
  0x2b   :  { %4993 = sst [smem:[#allocation57_spill]] %s4566_s9 }
  0x2c   :  { %s4586_s9 = sld [smem:[%s4973_s0 + %s4389_s22]]  }
  0x2d   :  { %4991 = sst [smem:[#allocation55_spill]] %s4551_s4 }
  0x2e   :  { %s4571_s4 = sld [smem:[%s4973_s0 + %s4386_s28]]  }
  0x2f   :  { %4992 = sst [smem:[#allocation56_spill]] %s4561_s17 }
  0x30   :  { %s4581_s17 = sld [smem:[%s4973_s0 + %s4388_s15]]  }
  0x31   :  { %71 = vsyncpa [#allocation3], 0 }
  0x32   :  { %72 = vsyncpa [#allocation6], 0 }
  0x33   :  { %73 = vsyncpa [#allocation9], 0 }
  0x34   :  { %74 = vsyncpa [#allocation12], 0 }
  0x35   :  { %75 = vsyncpa [#allocation15], 0 }
  0x36   :  { %76 = vsyncpa [#allocation18], 0 }
  0x37   :  { %77 = vsyncpa [#allocation21], 0 }
  0x38   :  { %78 = vsyncpa [#allocation24], 0 }
  0x39   :  { %79 = vsyncpa [#allocation27], 0 }
  0x3a   :  { %80 = vsyncpa [#allocation4], 0 }
  0x3b   :  { %81 = vsyncpa [#allocation30], 0  ;;  %s4390_s28 = smov [#allocation5]   ;;  %s4391_s2 = smov [#allocation8]  }
  0x3c   :  { %s106_s1 = sshll.u32 %s4390_s28, 4  ;;  %s127_s7 = sshll.u32 %s4391_s2, 4  ;;  %s107_s1 = int_to_ptr.vmem [resolvable:$true] %s106_s1  ;;  %s4588_s7 = int_to_ptr.vmem [resolvable:$true] %s127_s7 }
  0x3d   :  { %s3918_s0 = scalar_lea.hbm %s4451_s25, 16 }
  0x3e   :  { %p3919_p0 = scmp.ne.s32.totalorder %s4451_s25, %s3918_s0  ;;  %p3922_p1 = scmp.lt.u32.totalorder %s3918_s0, %s4451_s25 }
  0x40   :  { %p3924_p2 = pnand %p3922_p1, %p3919_p0 }
  0x42   :  { %3927 = shalt.err (!%p3924_p2)
}
  0x43   :  { %s3928_s10 = scalar_lea.vmem %s107_s1, 16  ;;  %s3932_s11 = scalar_lea.vmem %s107_s1, 32 }
  0x44   :  { %p3929_p3 = scmp.ne.s32.totalorder %s107_s1, %s3928_s10  ;;  %p3933_p4 = scmp.lt.s32.totalorder %s107_s1, %s107_s1 }
  0x45   :  { %p3934_p5 = scmp.lt.s32.totalorder %s3932_s11, %s3928_s10 }
  0x47   :  { %p3935_p6 = por %p3934_p5, %p3933_p4 }
  0x49   :  { %p3936_p7 = pnand %p3935_p6, %p3929_p3 }
  0x4b   :  { %3939 = shalt.err (!%p3936_p7)
}
  0x4c   :  { %109 = dma.hbm_to_vmem [thread:$0]  %s4451_s25, 16, %s107_s1, [#allocation6]  }
  0x4d   :  { %s3940_s15 = scalar_lea.hbm %s4466_s8, 2048 }
  0x4e   :  { %p3941_p8 = scmp.ne.s32.totalorder %s4466_s8, %s3940_s15  ;;  %p3944_p9 = scmp.lt.u32.totalorder %s3940_s15, %s4466_s8 }
  0x50   :  { %p3946_p10 = pnand %p3944_p9, %p3941_p8 }
  0x52   :  { %3949 = shalt.err (!%p3946_p10)
}
  0x53   :  { %s3950_s16 = scalar_lea.vmem %s4588_s7, 2048  ;;  %p3955_p12 = scmp.lt.s32.totalorder %s4588_s7, %s4588_s7 }
  0x54   :  { %p3951_p11 = scmp.ne.s32.totalorder %s4588_s7, %s3950_s16  ;;  %p3956_p13 = scmp.lt.s32.totalorder %s3950_s16, %s3950_s16 }
  0x56   :  { %p3957_p0 = por %p3956_p13, %p3955_p12 }
  0x58   :  { %p3958_p1 = pnand %p3957_p0, %p3951_p11 }
  0x5a   :  { %3961 = shalt.err (!%p3958_p1)
}
  0x5b   :  { %s4392_s18 = smov 128   ;;  %s4393_s25 = smov 8  }
  0x5c   :  { %133 = dma.hbm_to_vmem [thread:$0]  %s4466_s8, 2048, %s4588_s7, [#allocation9], %s4392_s18, %s4392_s18, %s4393_s25  }
  0x5d   :  { %s4394_s22 = smov [#allocation11]   ;;  %s4395_s26 = smov [#allocation14]  }
  0x5e   :  { %s150_s23 = sshll.u32 %s4394_s22, 4  ;;  %s169_s28 = sshll.u32 %s4395_s26, 4  ;;  %s151_s23 = int_to_ptr.vmem [resolvable:$true] %s150_s23  ;;  %s4606_s28 = int_to_ptr.vmem [resolvable:$true] %s169_s28 }
  0x5f   :  { %s3962_s1 = scalar_lea.hbm %s4476_s19, 16 }
  0x60   :  { %p3963_p2 = scmp.ne.s32.totalorder %s4476_s19, %s3962_s1  ;;  %p3966_p3 = scmp.lt.u32.totalorder %s3962_s1, %s4476_s19 }
  0x62   :  { %p3968_p4 = pnand %p3966_p3, %p3963_p2 }
  0x64   :  { %3971 = shalt.err (!%p3968_p4)
}
  0x65   :  { %s3972_s2 = scalar_lea.vmem %s151_s23, 16  ;;  %s3976_s0 = scalar_lea.vmem %s151_s23, 32 }
  0x66   :  { %p3973_p5 = scmp.ne.s32.totalorder %s151_s23, %s3972_s2  ;;  %p3977_p6 = scmp.lt.s32.totalorder %s151_s23, %s151_s23 }
  0x67   :  { %p3978_p7 = scmp.lt.s32.totalorder %s3976_s0, %s3972_s2 }
  0x69   :  { %p3979_p8 = por %p3978_p7, %p3977_p6 }
  0x6b   :  { %p3980_p9 = pnand %p3979_p8, %p3973_p5 }
  0x6d   :  { %3983 = shalt.err (!%p3980_p9)
}
  0x6e   :  { %153 = dma.hbm_to_vmem [thread:$0]  %s4476_s19, 16, %s151_s23, [#allocation12]  }
  0x6f   :  { %s3984_s8 = scalar_lea.hbm %s4486_s30, 4096 }
  0x70   :  { %p3985_p10 = scmp.ne.s32.totalorder %s4486_s30, %s3984_s8  ;;  %p3988_p11 = scmp.lt.u32.totalorder %s3984_s8, %s4486_s30 }
  0x72   :  { %p3990_p12 = pnand %p3988_p11, %p3985_p10 }
  0x74   :  { %3993 = shalt.err (!%p3990_p12)
}
  0x75   :  { %s3994_s7 = scalar_lea.vmem %s4606_s28, 4096  ;;  %p3999_p0 = scmp.lt.s32.totalorder %s4606_s28, %s4606_s28 }
  0x76   :  { %p3995_p13 = scmp.ne.s32.totalorder %s4606_s28, %s3994_s7  ;;  %p4000_p1 = scmp.lt.s32.totalorder %s3994_s7, %s3994_s7 }
  0x78   :  { %p4001_p2 = por %p4000_p1, %p3999_p0 }
  0x7a   :  { %p4002_p3 = pnand %p4001_p2, %p3995_p13 }
  0x7c   :  { %4005 = shalt.err (!%p4002_p3)
}
  0x7d   :  { %s4396_s10 = smov 256   ;;  %s4397_s19 = smov 16  }
  0x7e   :  { %175 = dma.hbm_to_vmem [thread:$0]  %s4486_s30, 4096, %s4606_s28, [#allocation15], %s4396_s10, %s4396_s10, %s4397_s19  }
  0x7f   :  { %s4398_s11 = smov [#allocation17]   ;;  %s4399_s16 = smov [#allocation20]  }
  0x80   :  { %s196_s15 = sshll.u32 %s4398_s11, 4  ;;  %s223_s22 = sshll.u32 %s4399_s16, 4  ;;  %s197_s15 = int_to_ptr.vmem [resolvable:$true] %s196_s15  ;;  %s4624_s22 = int_to_ptr.vmem [resolvable:$true] %s223_s22 }
  0x81   :  { %s4006_s23 = scalar_lea.hbm %s4501_s20, 16 }
  0x82   :  { %p4007_p4 = scmp.ne.s32.totalorder %s4501_s20, %s4006_s23  ;;  %p4010_p5 = scmp.lt.u32.totalorder %s4006_s23, %s4501_s20 }
  0x84   :  { %p4012_p6 = pnand %p4010_p5, %p4007_p4 }
  0x86   :  { %4015 = shalt.err (!%p4012_p6)
}
  0x87   :  { %s4016_s26 = scalar_lea.vmem %s197_s15, 16  ;;  %s4020_s1 = scalar_lea.vmem %s197_s15, 32 }
  0x88   :  { %p4017_p7 = scmp.ne.s32.totalorder %s197_s15, %s4016_s26  ;;  %p4021_p8 = scmp.lt.s32.totalorder %s197_s15, %s197_s15 }
  0x89   :  { %p4022_p9 = scmp.lt.s32.totalorder %s4020_s1, %s4016_s26 }
  0x8b   :  { %p4023_p10 = por %p4022_p9, %p4021_p8 }
  0x8d   :  { %p4024_p11 = pnand %p4023_p10, %p4017_p7 }
  0x8f   :  { %4027 = shalt.err (!%p4024_p11)
}
  0x90   :  { %199 = dma.hbm_to_vmem [thread:$0]  %s4501_s20, 16, %s197_s15, [#allocation18]  }
  0x91   :  { %s4028_s30 = scalar_lea.hbm %s4526_s27, 2048 }
  0x92   :  { %p4029_p12 = scmp.ne.s32.totalorder %s4526_s27, %s4028_s30  ;;  %p4032_p13 = scmp.lt.u32.totalorder %s4028_s30, %s4526_s27 }
  0x94   :  { %p4034_p0 = pnand %p4032_p13, %p4029_p12 }
  0x96   :  { %4037 = shalt.err (!%p4034_p0)
}
  0x97   :  { %s4038_s28 = scalar_lea.vmem %s4624_s22, 2048  ;;  %p4043_p2 = scmp.lt.s32.totalorder %s4624_s22, %s4624_s22 }
  0x98   :  { %p4039_p1 = scmp.ne.s32.totalorder %s4624_s22, %s4038_s28  ;;  %p4044_p3 = scmp.lt.s32.totalorder %s4038_s28, %s4038_s28 }
  0x9a   :  { %p4045_p4 = por %p4044_p3, %p4043_p2 }
  0x9c   :  { %p4046_p5 = pnand %p4045_p4, %p4039_p1 }
  0x9e   :  { %4049 = shalt.err (!%p4046_p5)
}
  0x9f   :  { %229 = dma.hbm_to_vmem [thread:$0]  %s4526_s27, 2048, %s4624_s22, [#allocation21], %s4392_s18, %s4392_s18, %s4393_s25  }
  0xa0   :  { %s4400_s20 = smov [#allocation23]   ;;  %s4401_s0 = smov [#allocation2]  }
  0xa1   :  { %s255_s2 = sshll.u32 %s4400_s20, 4  ;;  %s96_s8 = sshll.u32 %s4401_s0, 4  ;;  %s256_s2 = int_to_ptr.vmem [resolvable:$true] %s255_s2  ;;  %s97_s8 = int_to_ptr.vmem [resolvable:$true] %s96_s8 }
  0xa2   :  { %s4050_s7 = scalar_lea.hbm %s4556_s29, 4096 }
  0xa3   :  { %p4051_p6 = scmp.ne.s32.totalorder %s4556_s29, %s4050_s7  ;;  %p4054_p7 = scmp.lt.u32.totalorder %s4050_s7, %s4556_s29 }
  0xa5   :  { %p4056_p8 = pnand %p4054_p7, %p4051_p6 }
  0xa7   :  { %4059 = shalt.err (!%p4056_p8)
}
  0xa8   :  { %s4060_s11 = scalar_lea.vmem %s256_s2, 4096  ;;  %p4065_p10 = scmp.lt.s32.totalorder %s256_s2, %s256_s2 }
  0xa9   :  { %p4061_p9 = scmp.ne.s32.totalorder %s256_s2, %s4060_s11  ;;  %p4066_p11 = scmp.lt.s32.totalorder %s4060_s11, %s4060_s11 }
  0xab   :  { %p4067_p12 = por %p4066_p11, %p4065_p10 }
  0xad   :  { %p4068_p13 = pnand %p4067_p12, %p4061_p9 }
  0xaf   :  { %4071 = shalt.err (!%p4068_p13)
}
  0xb0   :  { %261 = dma.hbm_to_vmem [thread:$0]  %s4556_s29, 4096, %s256_s2, [#allocation24], %s4392_s18, %s4392_s18, %s4393_s25  }
  0xb1   :  { %s4072_s27 = scalar_lea.hbm %s4446_s21, 16 }
  0xb2   :  { %p4073_p0 = scmp.ne.s32.totalorder %s4446_s21, %s4072_s27  ;;  %p4076_p1 = scmp.lt.u32.totalorder %s4072_s27, %s4446_s21 }
  0xb4   :  { %p4078_p2 = pnand %p4076_p1, %p4073_p0 }
  0xb6   :  { %4081 = shalt.err (!%p4078_p2)
}
  0xb7   :  { %s4082_s15 = scalar_lea.vmem %s97_s8, 16  ;;  %s4086_s16 = scalar_lea.vmem %s97_s8, 32 }
  0xb8   :  { %p4083_p3 = scmp.ne.s32.totalorder %s97_s8, %s4082_s15  ;;  %p4087_p4 = scmp.lt.s32.totalorder %s97_s8, %s97_s8 }
  0xb9   :  { %p4088_p5 = scmp.lt.s32.totalorder %s4086_s16, %s4082_s15 }
  0xbb   :  { %p4089_p6 = por %p4088_p5, %p4087_p4 }
  0xbd   :  { %p4090_p7 = pnand %p4089_p6, %p4083_p3 }
  0xbf   :  { %4093 = shalt.err (!%p4090_p7)
}
  0xc0   :  { %99 = dma.hbm_to_vmem [thread:$0]  %s4446_s21, 16, %s97_s8, [#allocation3]  }
  0xc1   :  { %s4402_s22 = smov [#allocation7]   ;;  %s4403_s23 = smov [#allocation10]  }
  0xc2   :  { %s118_s29 = sshll.u32 %s4402_s22, 4  ;;  %s140_s26 = sshll.u32 %s4403_s23, 4  ;;  %s119_s29 = int_to_ptr.vmem [resolvable:$true] %s118_s29  ;;  %s141_s26 = int_to_ptr.vmem [resolvable:$true] %s140_s26 }
  0xc3   :  { %s4094_s1 = scalar_lea.hbm %s4461_s3, 16 }
  0xc4   :  { %p4095_p8 = scmp.ne.s32.totalorder %s4461_s3, %s4094_s1  ;;  %p4098_p9 = scmp.lt.u32.totalorder %s4094_s1, %s4461_s3 }
  0xc6   :  { %p4100_p10 = pnand %p4098_p9, %p4095_p8 }
  0xc8   :  { %4103 = shalt.err (!%p4100_p10)
}
  0xc9   :  { %s4104_s30 = scalar_lea.vmem %s119_s29, 16  ;;  %s4108_s28 = scalar_lea.vmem %s119_s29, 32 }
  0xca   :  { %p4105_p11 = scmp.ne.s32.totalorder %s119_s29, %s4104_s30  ;;  %p4109_p12 = scmp.lt.s32.totalorder %s119_s29, %s119_s29 }
  0xcb   :  { %p4110_p13 = scmp.lt.s32.totalorder %s4108_s28, %s4104_s30 }
  0xcd   :  { %p4111_p0 = por %p4110_p13, %p4109_p12 }
  0xcf   :  { %p4112_p1 = pnand %p4111_p0, %p4105_p11 }
  0xd1   :  { %4115 = shalt.err (!%p4112_p1)
}
  0xd2   :  { %121 = dma.hbm_to_vmem [thread:$0]  %s4461_s3, 16, %s119_s29, [#allocation6]  }
  0xd3   :  { %s4116_s21 = scalar_lea.hbm %s4471_s14, 16 }
  0xd4   :  { %p4117_p2 = scmp.ne.s32.totalorder %s4471_s14, %s4116_s21  ;;  %p4120_p3 = scmp.lt.u32.totalorder %s4116_s21, %s4471_s14 }
  0xd6   :  { %p4122_p4 = pnand %p4120_p3, %p4117_p2 }
  0xd8   :  { %4125 = shalt.err (!%p4122_p4)
}
  0xd9   :  { %s4126_s20 = scalar_lea.vmem %s141_s26, 16  ;;  %s4130_s2 = scalar_lea.vmem %s141_s26, 32 }
  0xda   :  { %p4127_p5 = scmp.ne.s32.totalorder %s141_s26, %s4126_s20  ;;  %p4131_p6 = scmp.lt.s32.totalorder %s141_s26, %s141_s26 }
  0xdb   :  { %p4132_p7 = scmp.lt.s32.totalorder %s4130_s2, %s4126_s20 }
  0xdd   :  { %p4133_p8 = por %p4132_p7, %p4131_p6 }
  0xdf   :  { %p4134_p9 = pnand %p4133_p8, %p4127_p5 }
  0xe1   :  { %4137 = shalt.err (!%p4134_p9)
}
  0xe2   :  { %143 = dma.hbm_to_vmem [thread:$0]  %s4471_s14, 16, %s141_s26, [#allocation9]  }
  0xe3   :  { %s4404_s0 = smov [#allocation13]   ;;  %s4405_s8 = smov [#allocation16]  }
  0xe4   :  { %s160_s3 = sshll.u32 %s4404_s0, 4  ;;  %s183_s7 = sshll.u32 %s4405_s8, 4  ;;  %s161_s3 = int_to_ptr.vmem [resolvable:$true] %s160_s3  ;;  %s4661_s7 = int_to_ptr.vmem [resolvable:$true] %s183_s7 }
  0xe5   :  { %s4138_s11 = scalar_lea.hbm %s4481_s24, 16 }
  0xe6   :  { %p4139_p10 = scmp.ne.s32.totalorder %s4481_s24, %s4138_s11  ;;  %p4142_p11 = scmp.lt.u32.totalorder %s4138_s11, %s4481_s24 }
  0xe8   :  { %p4144_p12 = pnand %p4142_p11, %p4139_p10 }
  0xea   :  { %4147 = shalt.err (!%p4144_p12)
}
  0xeb   :  { %s4148_s27 = scalar_lea.vmem %s161_s3, 16  ;;  %s4152_s15 = scalar_lea.vmem %s161_s3, 32 }
  0xec   :  { %p4149_p13 = scmp.ne.s32.totalorder %s161_s3, %s4148_s27  ;;  %p4153_p0 = scmp.lt.s32.totalorder %s161_s3, %s161_s3 }
  0xed   :  { %p4154_p1 = scmp.lt.s32.totalorder %s4152_s15, %s4148_s27 }
  0xef   :  { %p4155_p2 = por %p4154_p1, %p4153_p0 }
  0xf1   :  { %p4156_p3 = pnand %p4155_p2, %p4149_p13 }
  0xf3   :  { %4159 = shalt.err (!%p4156_p3)
}
  0xf4   :  { %163 = dma.hbm_to_vmem [thread:$0]  %s4481_s24, 16, %s161_s3, [#allocation12]  }
  0xf5   :  { %s4160_s14 = scalar_lea.hbm %s4496_s12, 4096 }
  0xf6   :  { %p4161_p4 = scmp.ne.s32.totalorder %s4496_s12, %s4160_s14  ;;  %p4164_p5 = scmp.lt.u32.totalorder %s4160_s14, %s4496_s12 }
  0xf8   :  { %p4166_p6 = pnand %p4164_p5, %p4161_p4 }
  0xfa   :  { %4169 = shalt.err (!%p4166_p6)
}
  0xfb   :  { %s4170_s16 = scalar_lea.vmem %s4661_s7, 4096  ;;  %p4175_p8 = scmp.lt.s32.totalorder %s4661_s7, %s4661_s7 }
  0xfc   :  { %p4171_p7 = scmp.ne.s32.totalorder %s4661_s7, %s4170_s16  ;;  %p4176_p9 = scmp.lt.s32.totalorder %s4170_s16, %s4170_s16 }
  0xfe   :  { %p4177_p10 = por %p4176_p9, %p4175_p8 }
 0x100   :  { %p4178_p11 = pnand %p4177_p10, %p4171_p7 }
 0x102   :  { %4181 = shalt.err (!%p4178_p11)
}
 0x103   :  { %189 = dma.hbm_to_vmem [thread:$0]  %s4496_s12, 4096, %s4661_s7, [#allocation15], %s4392_s18, %s4392_s18, %s4393_s25  }
 0x104   :  { %s4406_s24 = smov [#allocation19]   ;;  %s4407_s29 = smov [#allocation22]  }
 0x105   :  { %s209_s22 = sshll.u32 %s4406_s24, 4  ;;  %s241_s23 = sshll.u32 %s4407_s29, 4  ;;  %s210_s22 = int_to_ptr.vmem [resolvable:$true] %s209_s22  ;;  %s4679_s23 = int_to_ptr.vmem [resolvable:$true] %s241_s23 }
 0x106   :  { %s4182_s26 = scalar_lea.hbm %s4516_s6, 2048 }
 0x107   :  { %p4183_p12 = scmp.ne.s32.totalorder %s4516_s6, %s4182_s26  ;;  %p4186_p13 = scmp.lt.u32.totalorder %s4182_s26, %s4516_s6 }
 0x109   :  { %p4188_p0 = pnand %p4186_p13, %p4183_p12 }
 0x10b   :  { %4191 = shalt.err (!%p4188_p0)
}
 0x10c   :  { %s4192_s1 = scalar_lea.vmem %s210_s22, 2048  ;;  %p4197_p2 = scmp.lt.s32.totalorder %s210_s22, %s210_s22 }
 0x10d   :  { %p4193_p1 = scmp.ne.s32.totalorder %s210_s22, %s4192_s1  ;;  %p4198_p3 = scmp.lt.s32.totalorder %s4192_s1, %s4192_s1 }
 0x10f   :  { %p4199_p4 = por %p4198_p3, %p4197_p2 }
 0x111   :  { %p4200_p5 = pnand %p4199_p4, %p4193_p1 }
 0x113   :  { %4203 = shalt.err (!%p4200_p5)
}
 0x114   :  { %215 = dma.hbm_to_vmem [thread:$0]  %s4516_s6, 2048, %s210_s22, [#allocation18], %s4392_s18, %s4392_s18, %s4393_s25  }
 0x115   :  { %s4204_s12 = scalar_lea.hbm %s4546_s13, 4096 }
 0x116   :  { %p4205_p6 = scmp.ne.s32.totalorder %s4546_s13, %s4204_s12  ;;  %p4208_p7 = scmp.lt.u32.totalorder %s4204_s12, %s4546_s13 }
 0x118   :  { %p4210_p8 = pnand %p4208_p7, %p4205_p6 }
 0x11a   :  { %4213 = shalt.err (!%p4210_p8)
}
 0x11b   :  { %s4214_s30 = scalar_lea.vmem %s4679_s23, 4096  ;;  %p4219_p10 = scmp.lt.s32.totalorder %s4679_s23, %s4679_s23 }
 0x11c   :  { %p4215_p9 = scmp.ne.s32.totalorder %s4679_s23, %s4214_s30  ;;  %p4220_p11 = scmp.lt.s32.totalorder %s4214_s30, %s4214_s30 }
 0x11e   :  { %p4221_p12 = por %p4220_p11, %p4219_p10 }
 0x120   :  { %p4222_p13 = pnand %p4221_p12, %p4215_p9 }
 0x122   :  { %4225 = shalt.err (!%p4222_p13)
}
 0x123   :  { %s4994_s6 = sld [smem:[#allocation56_spill]]  ;;  %s4408_s28 = smov [#allocation25]  }
 0x124   :  { %247 = dma.hbm_to_vmem [thread:$0]  %s4546_s13, 4096, %s4679_s23, [#allocation21], %s4396_s10, %s4396_s10, %s4397_s19  }
 0x125   :  { %s268_s21 = sshll.u32 %s4408_s28, 4  ;;  %s4409_s20 = smov [#allocation26]   ;;  %s269_s21 = int_to_ptr.vmem [resolvable:$true] %s268_s21 }
 0x126   :  { %s280_s2 = sshll.u32 %s4409_s20, 4  ;;  %s281_s2 = int_to_ptr.vmem [resolvable:$true] %s280_s2 }
 0x129   :  { %s4226_s0 = scalar_lea.hbm %s4994_s6, 16 }
 0x12a   :  { %p4227_p0 = scmp.ne.s32.totalorder %s4994_s6, %s4226_s0  ;;  %p4230_p1 = scmp.lt.u32.totalorder %s4226_s0, %s4994_s6 }
 0x12c   :  { %p4232_p2 = pnand %p4230_p1, %p4227_p0 }
 0x12e   :  { %4235 = shalt.err (!%p4232_p2)
}
 0x12f   :  { %s4236_s3 = scalar_lea.vmem %s269_s21, 16  ;;  %s4240_s8 = scalar_lea.vmem %s269_s21, 32 }
 0x130   :  { %p4237_p3 = scmp.ne.s32.totalorder %s269_s21, %s4236_s3  ;;  %p4241_p4 = scmp.lt.s32.totalorder %s269_s21, %s269_s21 }
 0x131   :  { %p4242_p5 = scmp.lt.s32.totalorder %s4240_s8, %s4236_s3 }
 0x133   :  { %p4243_p6 = por %p4242_p5, %p4241_p4 }
 0x135   :  { %p4244_p7 = pnand %p4243_p6, %p4237_p3 }
 0x137   :  { %4247 = shalt.err (!%p4244_p7)
}
 0x138   :  { %271 = dma.hbm_to_vmem [thread:$0]  %s4994_s6, 16, %s269_s21, [#allocation24]  }
 0x139   :  { %s4248_s13 = scalar_lea.hbm %s4571_s4, 16 }
 0x13a   :  { %p4249_p8 = scmp.ne.s32.totalorder %s4571_s4, %s4248_s13  ;;  %p4252_p9 = scmp.lt.u32.totalorder %s4248_s13, %s4571_s4 }
 0x13c   :  { %p4254_p10 = pnand %p4252_p9, %p4249_p8 }
 0x13e   :  { %4257 = shalt.err (!%p4254_p10)
}
 0x13f   :  { %s4258_s10 = scalar_lea.vmem %s281_s2, 16  ;;  %s4262_s19 = scalar_lea.vmem %s281_s2, 32 }
 0x140   :  { %p4259_p11 = scmp.ne.s32.totalorder %s281_s2, %s4258_s10  ;;  %p4263_p12 = scmp.lt.s32.totalorder %s281_s2, %s281_s2 }
 0x141   :  { %p4264_p13 = scmp.lt.s32.totalorder %s4262_s19, %s4258_s10 }
 0x143   :  { %p4265_p0 = por %p4264_p13, %p4263_p12 }
 0x145   :  { %p4266_p1 = pnand %p4265_p0, %p4259_p11 }
 0x147   :  { %4269 = shalt.err (!%p4266_p1)
}
 0x148   :  { %283 = dma.hbm_to_vmem [thread:$0]  %s4571_s4, 16, %s281_s2, [#allocation27]  }
 0x149   :  { %4336 = dma.done.wait [#allocation3], 16  }
 0x14a   :  { %4337 = vsyncadd [#allocation3], 4294967280 }
 0x14b   :  { %4338 = dma.done.wait [#allocation6], 32  }
 0x14c   :  { %4339 = vsyncadd [#allocation6], 4294967264 }
 0x14d   :  { %4340 = dma.done.wait [#allocation9], 2064  }
 0x14e   :  { %4341 = vsyncadd [#allocation9], 4294965232 }
 0x14f   :  { %4342 = dma.done.wait [#allocation12], 32  }
 0x150   :  { %4343 = vsyncadd [#allocation12], 4294967264 }
 0x151   :  { %4344 = dma.done.wait [#allocation15], 8192  }
 0x152   :  { %4345 = vsyncadd [#allocation15], 4294959104 }
 0x153   :  { %4346 = dma.done.wait [#allocation18], 2064  }
 0x154   :  { %4347 = vsyncadd [#allocation18], 4294965232 }
 0x155   :  { %4348 = dma.done.wait [#allocation21], 6144  }
 0x156   :  { %4349 = vsyncadd [#allocation21], 4294961152 }
 0x157   :  { %4350 = dma.done.wait [#allocation24], 4112  }
 0x158   :  { %4351 = vsyncadd [#allocation24], 4294963184 }
 0x159   :  { %4352 = dma.done.wait [#allocation27], 16  }
 0x15a   :  { %4353 = vsyncadd [#allocation27], 4294967280  ;;  %s4995_s7 = sld [smem:[#allocation43_spill]]  ;;  %s4996_s4 = sld [smem:[#allocation44_spill]]  ;;  %v4410_v0 = vmov 0   ;;  %vm356_vm0 = vcmask 523264  }
 0x15b   :  { %3885 = vset.pattern.permute.xlu0 %v4410_v0  ;;  %s4997_s11 = sld [smem:[#allocation45_spill]]  ;;  %s4998_s27 = sld [smem:[#allocation47_spill]]  ;;  %vm4412_vm3 = vmmov 0   ;;  %vm1270_vm8 = vcmask 64512   ;;  %vm2677_vm10 = vcmask 1041409  }
 0x15c   :  { %s4999_s15 = sld [smem:[#allocation46_spill]]  ;;  %s5004_s14 = sld [smem:[#allocation48_spill]] }
 0x15d   :  { %s5005_s16 = sld [smem:[#allocation49_spill]]  ;;  %s5006_s24 = sld [smem:[#allocation50_spill]] }
 0x15e   :  { %s5007_s22 = sld [smem:[#allocation51_spill]]  ;;  %s5008_s29 = sld [smem:[#allocation52_spill]] }
 0x15f   :  { %s5009_s23 = sld [smem:[#allocation53_spill]]  ;;  %s5010_s26 = sld [smem:[#allocation54_spill]] }
 0x160   :  { %v332_v1 = vld [vmem:[%s4995_s7] sm:$0xff]  ;;  %v349_v3 = vld [vmem:[%s4996_s4 + $0x8] sm:$0xff]  ;;  %v350_v5 = vld [vmem:[%s4996_s4 + $0x10] sm:$0xff]  ;;  %s5011_s1 = sld [smem:[#allocation57_spill]]  ;;  %s5012_s12 = sld [smem:[#allocation55_spill]] }
 0x161   :  { %v348_v2 = vld [vmem:[%s4996_s4] sm:$0xff]  ;;  %337 = vperm.xlu0 %3885, %v332_v1   ;;  %v351_v6 = vld [vmem:[%s4996_s4 + $0x18] sm:$0xff]  ;;  %v333_v7 = vld [vmem:[%s4995_s7 + $0x8] sm:$0xff]  ;;  %v367_v8 = vand.u32 4294901760, %v349_v3  ;;  %v370_v9 = vand.u32 4294901760, %v350_v5  ;;  %s4415_s30 = smov [#allocation29]  }
 0x162   :  { %v364_v4 = vand.u32 4294901760, %v348_v2  ;;  %v373_v10 = vand.u32 4294901760, %v351_v6  ;;  %v352_v11 = vld [vmem:[%s4996_s4 + $0x20] sm:$0xff]  ;;  %v353_v12 = vld [vmem:[%s4996_s4 + $0x28] sm:$0xff]  ;;  %v354_v19 = vld [vmem:[%s4996_s4 + $0x30] sm:$0xff]  ;;  %s2771_s6 = sshll.u32 %s4415_s30, 4  ;;  %s2772_s6 = int_to_ptr.vmem [resolvable:$true] %s2771_s6 }
 0x163   :  { %v376_v15 = vand.u32 4294901760, %v352_v11  ;;  %v379_v16 = vand.u32 4294901760, %v353_v12  ;;  %v465_v18 = vsub.f32 %v349_v3, %v367_v8  ;;  %v355_v20 = vld [vmem:[%s4996_s4 + $0x38] sm:$0xff]  ;;  %v382_v24 = vand.u32 4294901760, %v354_v19  ;;  %s4270_s28 = scalar_lea.vmem %s2772_s6, 256  ;;  %p4275_p3 = scmp.lt.s32.totalorder %s2772_s6, %s2772_s6 }
 0x164   :  { %v4717_v13 = vpack.c.bf16 %v367_v8, %v364_v4  ;;  %v4719_v14 = vpack.c.bf16 %v373_v10, %v370_v9  ;;  %v458_v17 = vsub.f32 %v348_v2, %v364_v4  ;;  %v385_v25 = vand.u32 4294901760, %v355_v20  ;;  %p4271_p2 = scmp.ne.s32.totalorder %s2772_s6, %s4270_s28  ;;  %p4276_p4 = scmp.lt.s32.totalorder %s4270_s28, %s4270_s28 }
 0x165   :  { %340 = vperm.xlu0 %3885, %v333_v7   ;;  %v466_v22 = vand.u32 4294901760, %v465_v18  ;;  %v4726_v23 = vpack.c.bf16 %v379_v16, %v376_v15  ;;  %v472_v28 = vsub.f32 %v350_v5, %v370_v9  ;;  %v479_v29 = vsub.f32 %v351_v6, %v373_v10 }
 0x166   :  { %3440 = vmatprep.subr.bf16.mxu0 %v4717_v13  ;;  %v459_v21 = vand.u32 4294901760, %v458_v17  ;;  %v4730_v32 = vpack.c.bf16 %v385_v25, %v382_v24  ;;  %v486_v37 = vsub.f32 %v352_v11, %v376_v15  ;;  %v493_v38 = vsub.f32 %v353_v12, %v379_v16  ;;  %p4277_p5 = por %p4276_p4, %p4275_p3 }
 0x167   :  { %3442 = vmatpush3.bf16.msra.mxu0 %v4717_v13  ;;  %v467_v27 = vsub.f32 %v465_v18, %v466_v22  ;;  %v473_v33 = vand.u32 4294901760, %v472_v28  ;;  %v480_v34 = vand.u32 4294901760, %v479_v29  ;;  %v500_v47 = vsub.f32 %v354_v19, %v382_v24  ;;  %v943_v24 = vld [vmem:[%s4997_s11] sm:$0xff] }
 0x168   :  { %3444 = vmatprep.subr.bf16.mxu0 %v4719_v14  ;;  %v460_v26 = vsub.f32 %v458_v17, %v459_v21  ;;  %v487_v42 = vand.u32 4294901760, %v486_v37  ;;  %v494_v43 = vand.u32 4294901760, %v493_v38  ;;  %v507_v48 = vsub.f32 %v355_v20, %v385_v25  ;;  %p4278_p6 = pnand %p4277_p5, %p4271_p2 }
 0x169   :  { %v468_v31 = vand.u32 4294901760, %v467_v27  ;;  %v474_v35 = vsub.f32 %v472_v28, %v473_v33  ;;  %v481_v36 = vsub.f32 %v479_v29, %v480_v34  ;;  %v501_v51 = vand.u32 4294901760, %v500_v47 }
 0x16a   :  { %v461_v30 = vand.u32 4294901760, %v460_v26  ;;  %v488_v45 = vsub.f32 %v486_v37, %v487_v42  ;;  %v495_v46 = vsub.f32 %v493_v38, %v494_v43  ;;  %v508_v52 = vand.u32 4294901760, %v507_v48 }
 0x16b   :  { %3446 = vmatpush3.bf16.msra.mxu0 %v4719_v14  ;;  %v475_v40 = vand.u32 4294901760, %v474_v35  ;;  %v482_v41 = vand.u32 4294901760, %v481_v36  ;;  %v502_v54 = vsub.f32 %v500_v47, %v501_v51  ;;  %v3471_v59 = vpack.c.bf16 %v465_v18, %v458_v17 }
 0x16c   :  { %3448 = vmatprep.subr.bf16.mxu0 %v4726_v23  ;;  %v3455_v39 = vpack.c.bf16 %v468_v31, %v461_v30  ;;  %v489_v49 = vand.u32 4294901760, %v488_v45  ;;  %v496_v50 = vand.u32 4294901760, %v495_v46  ;;  %v509_v55 = vsub.f32 %v507_v48, %v508_v52  ;;  %v1018_v30 = vld [vmem:[%s4998_s27 + $0x10] sm:$0xff]  ;;  %v1023_v46 = vld [vmem:[%s4998_s27 + $0x38] sm:$0xff] }
 0x16d   :  { %v3459_v44 = vpack.c.bf16 %v482_v41, %v475_v40  ;;  %v503_v56 = vand.u32 4294901760, %v502_v54  ;;  %v3475_v60 = vpack.c.bf16 %v479_v29, %v472_v28  ;;  %v3479_v61 = vpack.c.bf16 %v493_v38, %v486_v37  ;;  %v1017_v29 = vld [vmem:[%s4998_s27 + $0x8] sm:$0xff]  ;;  %v1022_v45 = vld [vmem:[%s4998_s27 + $0x30] sm:$0xff] }
 0x16e   :  { %v3463_v53 = vpack.c.bf16 %v496_v50, %v489_v49  ;;  %v510_v57 = vand.u32 4294901760, %v509_v55  ;;  %v3483_v62 = vpack.c.bf16 %v507_v48, %v500_v47  ;;  %v3503_v63 = vpack.c.bf16 %v466_v22, %v459_v21  ;;  %v1024_v48 = vld [vmem:[%s4998_s27 + $0x40] sm:$0xff]  ;;  %v1025_v49 = vld [vmem:[%s4998_s27 + $0x48] sm:$0xff] }
 0x16f   :  { %3450 = vmatpush3.bf16.msra.mxu0 %v4726_v23  ;;  %v3507_v1 = vpack.c.bf16 %v480_v34, %v473_v33  ;;  %v3511_v2 = vpack.c.bf16 %v494_v43, %v487_v42  ;;  %v3515_v3 = vpack.c.bf16 %v508_v52, %v501_v51  ;;  %v334_v4 = vlaneseq  ;;  %v1020_v42 = vld [vmem:[%s4998_s27 + $0x20] sm:$0xff]  ;;  %v1021_v43 = vld [vmem:[%s4998_s27 + $0x28] sm:$0xff]  ;;  %v1026_v51 = vld [vmem:[%s4998_s27 + $0x50] sm:$0xff] }
 0x170   :  { %3452 = vmatprep.subr.bf16.mxu0 %v4730_v32  ;;  %v3467_v58 = vpack.c.bf16 %v510_v57, %v503_v56  ;;  %v4411_v7 = vmov 0.0   ;;  %v3547_v47 = vpack.c.bf16 %v1023_v46, %v1022_v45  ;;  %v3551_v50 = vpack.c.bf16 %v1025_v49, %v1024_v48  ;;  %v1027_v52 = vld [vmem:[%s4998_s27 + $0x58] sm:$0xff]  ;;  %v1029_v55 = vld [vmem:[%s4998_s27 + $0x68] sm:$0xff]  ;;  %v1030_v57 = vld [vmem:[%s4998_s27 + $0x70] sm:$0xff] }
 0x171   :  { %v335_v5 = vand.u32 127, %v334_v4  ;;  %v3555_v54 = vpack.c.bf16 %v1027_v52, %v1026_v51 }
 0x173   :  { %3454 = vmatpush3.bf16.msra.mxu0 %v4730_v32 }
 0x174   :  { %3456 = vmatprep.subr.bf16.mxu0 %v3455_v39 }
 0x1e0   :  { %v338_v6 = vpop.permute.xlu0 %337 }
 0x1e1   :  { %vm342_vm1 = vcmp.eq.s32.totalorder %v335_v5, %v338_v6 }
 0x1e2   :  { %v2842_v8 = vsel %vm342_vm1, 1.0, %v4411_v7 }
 0x1e3   :  { %v358_v9 = vsel %vm356_vm0, %v2842_v8, 0 }
 0x1e4   :  { %v341_v10 = vpop.permute.xlu0 %340  ;;  %v437_v11 = vsub.f32 %v358_v9, %v358_v9 }
 0x1e5   :  { %vm343_vm2 = vcmp.eq.s32.totalorder %v335_v5, %v341_v10  ;;  %v2850_v5 = vld [vmem:[#allocation2] ss:$0 sm:$0xff] }
 0x1e6   :  { %v2843_v12 = vsel %vm343_vm2, 1.0, %v4411_v7  ;;  %v438_v15 = vand.u32 4294901760, %v437_v11 }
 0x1e7   :  { %v361_v16 = vsel %vm356_vm0, %v2843_v12, 0 }
 0x1e8   :  { %v447_v17 = vsub.f32 %v361_v16, %v361_v16  ;;  %v439_v18 = vsub.f32 %v437_v11, %v438_v15 }
 0x1ea   :  { %v440_v19 = vand.u32 4294901760, %v439_v18  ;;  %v448_v20 = vand.u32 4294901760, %v447_v17 }
 0x1ec   :  { %3126 = vmatprep.mubr.f32.mxu0 %v440_v19  ;;  %v449_v21 = vsub.f32 %v447_v17, %v448_v20 }
 0x1ee   :  { %v450_v22 = vand.u32 4294901760, %v449_v21 }
 0x1f0   :  { %3127 = vmatmul.mubr.f32.vlgmr.msra.gmra.mrb[0].mxu0 %v450_v22 }
 0x1f1   :  { %3458 = vmatpush3.bf16.msra.mxu0 %v3455_v39  ;;  %3145 = vmatprep.mubr.msk.f32.mxu0 %vm356_vm0, %v2842_v8 }
 0x1f2   :  { %3460 = vmatprep.subr.bf16.mxu0 %v3459_v44 }
 0x1f5   :  { %3462 = vmatpush3.bf16.msra.mxu0 %v3459_v44  ;;  %v3543_v44 = vpack.c.bf16 %v1021_v43, %v1020_v42 }
 0x1f6   :  { %3464 = vmatprep.subr.bf16.mxu0 %v3463_v53 }
 0x1f9   :  { %3466 = vmatpush3.bf16.msra.mxu0 %v3463_v53  ;;  %v1028_v53 = vld [vmem:[%s4998_s27 + $0x60] sm:$0xff] }
 0x1fa   :  { %3468 = vmatprep.subr.bf16.mxu0 %v3467_v58  ;;  %v3559_v56 = vpack.c.bf16 %v1029_v55, %v1028_v53 }
 0x1fd   :  { %3470 = vmatpush3.bf16.msra.mxu0 %v3467_v58  ;;  %v1031_v58 = vld [vmem:[%s4998_s27 + $0x78] sm:$0xff] }
 0x1fe   :  { %3472 = vmatprep.subr.bf16.mxu0 %v3471_v59 }
 0x200   :  { %3146 = vmatmul.mubr.msk.f32.vlgmr.msra.gmra.mrb[0].mxu0 %vm356_vm0, %v2843_v12 }
 0x201   :  { %3474 = vmatpush3.bf16.msra.mxu0 %v3471_v59  ;;  %3164 = vmatprep.mubr.f32.mxu0 %v437_v11  ;;  %v3563_v59 = vpack.c.bf16 %v1031_v58, %v1030_v57 }
 0x202   :  { %3476 = vmatprep.subr.bf16.mxu0 %v3475_v60 }
 0x205   :  { %3478 = vmatpush3.bf16.msra.mxu0 %v3475_v60 }
 0x206   :  { %3480 = vmatprep.subr.bf16.mxu0 %v3479_v61 }
 0x209   :  { %3482 = vmatpush3.bf16.msra.mxu0 %v3479_v61 }
 0x20a   :  { %3484 = vmatprep.subr.bf16.mxu0 %v3483_v62 }
 0x20d   :  { %3486 = vmatpush3.bf16.msra.mxu0 %v3483_v62 }
 0x20e   :  { %3488 = vmatprep.subr.bf16.mxu0 %v4717_v13 }
 0x210   :  { %3165 = vmatmul.mubr.f32.vlgmr.msra.gmra.mrb[0].mxu0 %v447_v17  ;;  %v2852_v17 = vld [vmem:[#allocation7] ss:$0 sm:$0xff] }
 0x211   :  { %3490 = vmatpush3.bf16.msra.mxu0 %v4717_v13  ;;  %3183 = vmatprep.mubr.f32.mxu0 %v438_v15 }
 0x212   :  { %3492 = vmatprep.subr.bf16.mxu0 %v4719_v14 }
 0x215   :  { %3494 = vmatpush3.bf16.msra.mxu0 %v4719_v14 }
 0x216   :  { %3496 = vmatprep.subr.bf16.mxu0 %v4726_v23 }
 0x219   :  { %3498 = vmatpush3.bf16.msra.mxu0 %v4726_v23 }
 0x21a   :  { %3500 = vmatprep.subr.bf16.mxu0 %v4730_v32 }
 0x21d   :  { %3502 = vmatpush3.bf16.msra.mxu0 %v4730_v32 }
 0x21e   :  { %3504 = vmatprep.subr.bf16.mxu0 %v3503_v63 }
 0x220   :  { %3184 = vmatmul.mubr.f32.vlgmr.msra.gmra.mrb[0].mxu0 %v448_v20 }
 0x221   :  { %3506 = vmatpush3.bf16.msra.mxu0 %v3503_v63  ;;  %3202 = vmatprep.mubr.msk.f32.mxu0 %vm356_vm0, %v2842_v8 }
 0x222   :  { %3508 = vmatprep.subr.bf16.mxu0 %v3507_v1 }
 0x225   :  { %3510 = vmatpush3.bf16.msra.mxu0 %v3507_v1 }
 0x226   :  { %3512 = vmatprep.subr.bf16.mxu0 %v3511_v2 }
 0x229   :  { %3514 = vmatpush3.bf16.msra.mxu0 %v3511_v2 }
 0x22a   :  { %3516 = vmatprep.subr.bf16.mxu0 %v3515_v3 }
 0x22d   :  { %3518 = vmatpush3.bf16.msra.mxu0 %v3515_v3 }
 0x22e   :  { %3520 = vmatprep.subr.bf16.mxu0 %v4717_v13 }
 0x230   :  { %3203 = vmatmul.mubr.msk.f32.vlgmr.msra.gmra.mrb[0].mxu0 %vm356_vm0, %v2843_v12 }
 0x231   :  { %3522 = vmatpush3.bf16.msra.mxu0 %v4717_v13  ;;  %3221 = vmatprep.mubr.msk.f32.mxu0 %vm356_vm0, %v2842_v8  ;;  %v2851_v8 = vld [vmem:[#allocation5] ss:$0 sm:$0xff] }
 0x232   :  { %3524 = vmatprep.subr.bf16.mxu0 %v4719_v14 }
 0x235   :  { %3526 = vmatpush3.bf16.msra.mxu0 %v4719_v14 }
 0x236   :  { %3528 = vmatprep.subr.bf16.mxu0 %v4726_v23 }
 0x239   :  { %3530 = vmatpush3.bf16.msra.mxu0 %v4726_v23  ;;  %v1016_v23 = vld [vmem:[%s4998_s27] sm:$0xff] }
 0x23a   :  { %3532 = vmatprep.subr.bf16.mxu0 %v4730_v32  ;;  %v3535_v31 = vpack.c.bf16 %v1017_v29, %v1016_v23 }
 0x23c   :  { %3536 = vmatprep.subr.bf16.mxu1 %v3535_v31 }
 0x23d   :  { %3534 = vmatpush3.bf16.msra.mxu0 %v4730_v32  ;;  %v1019_v32 = vld [vmem:[%s4998_s27 + $0x18] sm:$0xff]  ;;  %3538 = vmatpush3.bf16.msra.mxu1 %v3535_v31 }
 0x23e   :  { %v3539_v33 = vpack.c.bf16 %v1019_v32, %v1018_v30 }
 0x240   :  { %3222 = vmatmul.mubr.msk.f32.vlgmr.msra.gmra.mrb[0].mxu0 %vm356_vm0, %v2843_v12  ;;  %3540 = vmatprep.subr.bf16.mxu1 %v3539_v33 }
 0x241   :  { %3542 = vmatpush3.bf16.msra.mxu1 %v3539_v33 }
 0x242   :  { %3544 = vmatprep.subr.bf16.mxu1 %v3543_v44 }
 0x245   :  { %3546 = vmatpush3.bf16.msra.mxu1 %v3543_v44 }
 0x246   :  { %3548 = vmatprep.subr.bf16.mxu1 %v3547_v47 }
 0x249   :  { %3550 = vmatpush3.bf16.msra.mxu1 %v3547_v47 }
 0x24a   :  { %3552 = vmatprep.subr.bf16.mxu1 %v3551_v50 }
 0x24d   :  { %3554 = vmatpush3.bf16.msra.mxu1 %v3551_v50 }
 0x24e   :  { %3556 = vmatprep.subr.bf16.mxu1 %v3555_v54 }
 0x251   :  { %3558 = vmatpush3.bf16.msra.mxu1 %v3555_v54 }
 0x252   :  { %3560 = vmatprep.subr.bf16.mxu1 %v3559_v56 }
 0x255   :  { %3562 = vmatpush3.bf16.msra.mxu1 %v3559_v56 }
 0x256   :  { %3564 = vmatprep.subr.bf16.mxu1 %v3563_v59 }
 0x259   :  { %3566 = vmatpush3.bf16.msra.mxu1 %v3563_v59 }
 0x25a   :  { %3259 = vmatprep.subr.mxu1 %v4411_v7 }
 0x313   :  { %v3223_v13 = vpop.f32.mrb[0].mxu0 }
 0x314   :  { %v933_v25 = vpop.f32.mrb[1].mxu0  ;;  %v945_v27 = vmul.f32 11.313708, %v3223_v13 }
 0x315   :  { %v944_v26 = vmul.f32 11.313708, %v933_v25 }
 0x316   :  { %v4766_v14 = vadd.f32 %v945_v27, %v943_v24  ;;  %v4803_v27 = vshrl.u32 %v334_v4, 7 }
 0x317   :  { %v4763_v28 = vadd.f32 %v944_v26, %v943_v24  ;;  %v4413_v24 = vmov 1966171168   ;;  %v948_v26 = vld [vmem:[%s4999_s15] sm:$0x3] }
 0x318   :  { %v952_v25 = vunpack.c.l.s4 %v4413_v24  ;;  %vm949_vm4 = vcmp.eq.s32.totalorder %v948_v26, 0  ;;  %v1452_v24 = vld [vmem:[#allocation8 + $0x68] sm:$0xff]  ;;  %v1453_v26 = vld [vmem:[#allocation8 + $0x70] sm:$0xff] }
 0x319   :  { %977 = vadd.xlane.f32.xlu1 %v4763_v28  ;;  %v950_v30 = vsel %vm949_vm4, 1, %v4410_v0 }
 0x31a   :  { %v953_v23 = vunpack.c.0.s8 %v952_v25 }
 0x31c   :  { %v956_v29 = vsub.s32 %v953_v23, %v4803_v27  ;;  %v1454_v23 = vld [vmem:[#allocation8 + $0x78] sm:$0xff] }
 0x31d   :  { %979 = vadd.xlane.f32.xlu1 %v4766_v14 }
 0x31e   :  { %v957_v31 = vrot.slane %v950_v30, %v956_v29 }
 0x320   :  { %v965_v32 = vrot.slane %v957_v31, %v956_v29  ;;  %v958_v33 = vcombine.high %v957_v31, %v957_v31 }
 0x322   :  { %vm973_vm5 = vcmp.ne.s32.totalorder %v965_v32, 0 }
 0x3a6   :  { %v978_v34 = vpop.xlane.xlu1 %977 }
 0x3a7   :  { %v982_v35 = vmul.f32 0.0078125, %v978_v34  ;;  %v972_v34 = vrot.slane %v958_v33, %v956_v29  ;;  %v3595_v29 = vpack.c.bf16 %v1454_v23, %v1453_v26  ;;  %v1606_v26 = vld [vmem:[#allocation14 + $0xd8] sm:$0xff]  ;;  %v1603_v23 = vld [vmem:[#allocation14 + $0xc0] sm:$0xff] }
 0x3a9   :  { %v984_v36 = vsub.f32 %v4763_v28, %v982_v35  ;;  %v4808_v35 = vsub.s32 0, %v4803_v27  ;;  %vm974_vm6 = vcmp.ne.s32.totalorder %v972_v34, 0  ;;  %v2855_v34 = vld [vmem:[#allocation10] ss:$0 sm:$0xff] }
 0x3aa   :  { %v980_v37 = vpop.xlane.xlu1 %979 }
 0x3ab   :  { %v983_v38 = vmul.f32 0.0078125, %v980_v37  ;;  %v986_v39 = vmul.f32 %v984_v36, %v984_v36  ;;  %v1257_v37 = vsel %vm974_vm6, 1, %v4410_v0 }
 0x3ad   :  { %v985_v40 = vsub.f32 %v4766_v14, %v983_v38  ;;  %988 = vadd.xlane.f32.xlu0 %v986_v39  ;;  %v1265_v39 = vrot.slane %v1257_v37, %v4808_v35 }
 0x3af   :  { %v987_v41 = vmul.f32 %v985_v40, %v985_v40  ;;  %vm4821_vm9 = vcmp.eq.s32.totalorder %v1265_v39, 1 }
 0x3b1   :  { %990 = vadd.xlane.f32.xlu1 %v987_v41 }
 0x43a   :  { %v989_v60 = vpop.xlane.xlu0 %988 }
 0x43b   :  { %v992_v61 = vmul.f32 0.0078125, %v989_v60  ;;  %v1439_v60 = vld [vmem:[#allocation8] sm:$0xff] }
 0x43d   :  { %v994_v62 = vadd.f32 1e-05, %v992_v61  ;;  %v1440_v61 = vld [vmem:[#allocation8 + $0x8] sm:$0xff] }
 0x43e   :  { %v991_v63 = vpop.xlane.xlu1 %990 }
 0x43f   :  { %3886 = vrsqrt.f32 %v994_v62  ;;  %v993_v1 = vmul.f32 0.0078125, %v991_v63 }
 0x441   :  { %v995_v2 = vadd.f32 1e-05, %v993_v1  ;;  %v3567_v1 = vpack.c.bf16 %v1440_v61, %v1439_v60 }
 0x443   :  { %3888 = vrsqrt.f32 %v995_v2  ;;  %v1441_v2 = vld [vmem:[#allocation8 + $0x10] sm:$0xff] }
 0x449   :  { %v3887_v3 = vpop.eup %3886 }
 0x44a   :  { %v998_v6 = vmul.f32 %v3887_v3, %v984_v36  ;;  %v1256_v36 = vsel %vm973_vm5, 1, %v4410_v0  ;;  %v1442_v3 = vld [vmem:[#allocation8 + $0x18] sm:$0xff] }
 0x44b   :  { %v1261_v4 = vrot.slane %v1256_v36, %v4808_v35 }
 0x44c   :  { %v1006_v9 = vmul.f32 %v2850_v5, %v998_v6 }
 0x44d   :  { %v3889_v10 = vpop.eup %3888  ;;  %vm4813_vm7 = vcmp.eq.s32.totalorder %v1261_v4, 1 }
 0x44e   :  { %v999_v11 = vmul.f32 %v3889_v10, %v985_v40  ;;  %v1014_v12 = vadd.f32 %v2851_v8, %v1006_v9  ;;  %v1443_v9 = vld [vmem:[#allocation8 + $0x20] sm:$0xff]  ;;  %v1444_v10 = vld [vmem:[#allocation8 + $0x28] sm:$0xff] }
 0x450   :  { %v1007_v15 = vmul.f32 %v2850_v5, %v999_v11  ;;  %3256 = vmatprep.mubr.f32.mxu1 %v1014_v12  ;;  %v3575_v11 = vpack.c.bf16 %v1444_v10, %v1443_v9  ;;  %v1445_v12 = vld [vmem:[#allocation8 + $0x30] sm:$0xff] }
 0x451   :  { %v1593_v9 = vld [vmem:[#allocation14 + $0x70] sm:$0xff] }
 0x452   :  { %v1015_v16 = vadd.f32 %v2851_v8, %v1007_v15  ;;  %v3571_v8 = vpack.c.bf16 %v1442_v3, %v1441_v2  ;;  %v1446_v15 = vld [vmem:[#allocation8 + $0x38] sm:$0xff]  ;;  %v1592_v3 = vld [vmem:[#allocation14 + $0x68] sm:$0xff] }
 0x454   :  { %3257 = vmatmul.mubr.f32.vlgmr.msra.gmra.mrb[0].mxu1 %v1015_v16  ;;  %v3579_v16 = vpack.c.bf16 %v1446_v15, %v1445_v12  ;;  %v1598_v12 = vld [vmem:[#allocation14 + $0x98] sm:$0xff] }
 0x455   :  { %3261 = vmatprep.mubr.msk.f32.mxu1 %vm4412_vm3, %v4411_v7 }
 0x527   :  { %v3258_v18 = vpop.f32.mrb[0].mxu1 }
 0x528   :  { %v1105_v19 = vpop.f32.mrb[1].mxu1  ;;  %v4790_v21 = vadd.f32 %v3258_v18, %v2852_v17  ;;  %v1448_v18 = vld [vmem:[#allocation8 + $0x48] sm:$0xff] }
 0x529   :  { %v1106_v20 = vadd.f32 %v2852_v17, %v1105_v19  ;;  %v1447_v17 = vld [vmem:[#allocation8 + $0x40] sm:$0xff] }
 0x52a   :  { %v1115_v13 = vmul.f32 0.088388346, %v4790_v21  ;;  %v3583_v19 = vpack.c.bf16 %v1448_v18, %v1447_v17  ;;  %v1597_v17 = vld [vmem:[#allocation14 + $0x90] sm:$0xff] }
 0x52b   :  { %v1114_v22 = vmul.f32 0.088388346, %v1106_v20 }
 0x52d   :  { %3260 = vmatpush3.xpose.msra.mxu1 %v1114_v22 }
 0x52e   :  { %3264 = vmatprep.subr.mxu1 %v4411_v7 }
 0x530   :  { %3262 = vmatmul.mubr.f32.vlgmr.msra.gmra.mrb[2].mxu1 %v1106_v20 }
 0x531   :  { %3265 = vmatpush3.xpose.msra.mxu1 %v1115_v13  ;;  %3266 = vmatprep.mubr.msk.f32.mxu1 %vm4412_vm3, %v4411_v7  ;;  %v1451_v13 = vld [vmem:[#allocation8 + $0x60] sm:$0xff] }
 0x532   :  { %3269 = vmatprep.subr.mxu1 %v4411_v7  ;;  %v3591_v25 = vpack.c.bf16 %v1452_v24, %v1451_v13  ;;  %v1601_v13 = vld [vmem:[#allocation14 + $0xb0] sm:$0xff]  ;;  %v1604_v24 = vld [vmem:[#allocation14 + $0xc8] sm:$0xff] }
 0x534   :  { %3267 = vmatmul.mubr.f32.vlgmr.msra.gmra.mrb[4].mxu1 %v4790_v21 }
 0x535   :  { %3270 = vmatpush3.msra.mxu1 %v1106_v20  ;;  %3271 = vmatprep.mubr.msk.f32.mxu1 %vm4412_vm3, %v4411_v7  ;;  %v1449_v20 = vld [vmem:[#allocation8 + $0x50] sm:$0xff] }
 0x536   :  { %3274 = vmatprep.subr.mxu1 %v4411_v7 }
 0x603   :  { %v1182_v40 = vpop.f32.mrb[2].mxu1 }
 0x604   :  { %v1268_v41 = vsel %vm4813_vm7, -1e+09, %v1182_v40  ;;  %v3263_v42 = vpop.f32.mrb[3].mxu1 }
 0x605   :  { %v1271_v43 = vsel %vm1270_vm8, %v1268_v41, -inf  ;;  %v1580_v42 = vld [vmem:[#allocation14 + $0x8] sm:$0xff] }
 0x606   :  { %1272 = vmax.xlane.f32.xlu1 %v1271_v43  ;;  %v1582_v43 = vld [vmem:[#allocation14 + $0x18] sm:$0xff] }
 0x607   :  { %v1252_v0 = vpop.f32.mrb[4].mxu1 }
 0x608   :  { %v1269_v45 = vsel %vm4821_vm9, -1e+09, %v1252_v0  ;;  %v3268_v46 = vpop.f32.mrb[5].mxu1  ;;  %v1579_v0 = vld [vmem:[#allocation14] sm:$0xff] }
 0x609   :  { %v1274_v47 = vsel %vm1270_vm8, %v1269_v45, -inf  ;;  %v1581_v46 = vld [vmem:[#allocation14 + $0x10] sm:$0xff] }
 0x60a   :  { %1275 = vmax.xlane.f32.xlu1 %v1274_v47  ;;  %v1584_v47 = vld [vmem:[#allocation14 + $0x28] sm:$0xff] }
 0x693   :  { %v1273_v48 = vpop.xlane.xlu1 %1272 }
 0x694   :  { %v1277_v49 = vsub.f32 %v1268_v41, %v1273_v48  ;;  %v1586_v48 = vld [vmem:[#allocation14 + $0x38] sm:$0xff] }
 0x696   :  { %v1279_v50 = vmul.f32 1.442695, %v1277_v49  ;;  %v3601_v49 = vpack.c.bf16 %v1581_v46, %v1579_v0  ;;  %v1722_v46 = vld [vmem:[#allocation16 + $0x90] sm:$0xff] }
 0x697   :  { %v1276_v51 = vpop.xlane.xlu1 %1275 }
 0x698   :  { %3890 = vpow2.f32 %v1279_v50  ;;  %v1278_v52 = vsub.f32 %v1269_v45, %v1276_v51  ;;  %v3599_v45 = vpack.c.bf16 %v1582_v43, %v1580_v42  ;;  %v3603_v50 = vpack.c.bf16 %v1586_v48, %v1584_v47  ;;  %v1583_v51 = vld [vmem:[#allocation14 + $0x20] sm:$0xff]  ;;  %v1721_v42 = vld [vmem:[#allocation16 + $0x88] sm:$0xff]  ;;  %v1723_v47 = vld [vmem:[#allocation16 + $0x98] sm:$0xff] }
 0x699   :  { %v1704_v43 = vld [vmem:[#allocation16] sm:$0xff] }
 0x69a   :  { %v1281_v53 = vmul.f32 1.442695, %v1278_v52  ;;  %v1585_v52 = vld [vmem:[#allocation14 + $0x30] sm:$0xff] }
 0x69c   :  { %3892 = vpow2.f32 %v1281_v53  ;;  %v1590_v53 = vld [vmem:[#allocation14 + $0x58] sm:$0xff] }
 0x6a2   :  { %v3891_v54 = vpop.eup %3890 }
 0x6a3   :  { %v1283_v55 = vsel %vm1270_vm8, %v3891_v54, 0.0 }
 0x6a4   :  { %1284 = vadd.xlane.f32.xlu1 %v1283_v55  ;;  %v1587_v55 = vld [vmem:[#allocation14 + $0x40] sm:$0xff] }
 0x6a6   :  { %v3893_v56 = vpop.eup %3892 }
 0x6a7   :  { %v1286_v57 = vsel %vm1270_vm8, %v3893_v56, 0.0 }
 0x6a8   :  { %1287 = vadd.xlane.f32.xlu1 %v1286_v57 }
 0x731   :  { %v1285_v58 = vpop.xlane.xlu1 %1284 }
 0x732   :  { %3894 = vrcp.f32 %v1285_v58 }
 0x735   :  { %v1288_v59 = vpop.xlane.xlu1 %1287 }
 0x736   :  { %3896 = vrcp.f32 %v1288_v59 }
 0x73c   :  { %v3895_v62 = vpop.eup %3894 }
 0x73d   :  { %v1291_v63 = vmul.f32 %v3895_v62, %v3891_v54  ;;  %v3605_v54 = vpack.c.bf16 %v1585_v52, %v1583_v51  ;;  %v1707_v51 = vld [vmem:[#allocation16 + $0x18] sm:$0xff]  ;;  %v1724_v52 = vld [vmem:[#allocation16 + $0xa0] sm:$0xff] }
 0x73f   :  { %2752 = vst.msk [vmem:[#allocation29] sm:$0xff] %vm1270_vm8, %v1291_v63  ;;  %3272 = vmatmul.mubr.msk.f32.vlgmr.msra.gmra.mrb[6].mxu1 %vm1270_vm8, %v1291_v63 }
 0x740   :  { %v3897_v5 = vpop.eup %3896  ;;  %3275 = vmatpush3.msra.mxu1 %v4790_v21  ;;  %3276 = vmatprep.mubr.msk.f32.mxu1 %vm4412_vm3, %v4411_v7  ;;  %v1450_v21 = vld [vmem:[#allocation8 + $0x58] sm:$0xff] }
 0x741   :  { %v1292_v6 = vmul.f32 %v3897_v5, %v3893_v56  ;;  %3568 = vmatprep.subr.bf16.mxu1 %v3567_v1  ;;  %v3587_v22 = vpack.c.bf16 %v1450_v21, %v1449_v20  ;;  %v1589_v56 = vld [vmem:[#allocation14 + $0x50] sm:$0xff]  ;;  %v1594_v5 = vld [vmem:[#allocation14 + $0x78] sm:$0xff] }
 0x742   :  { %v3609_v57 = vpack.c.bf16 %v1589_v56, %v1587_v55  ;;  %v1602_v20 = vld [vmem:[#allocation14 + $0xb8] sm:$0xff]  ;;  %v1709_v55 = vld [vmem:[#allocation16 + $0x28] sm:$0xff]  ;;  %v1726_v56 = vld [vmem:[#allocation16 + $0xb0] sm:$0xff] }
 0x743   :  { %2753 = vst.msk [vmem:[#allocation29 + $0x8] sm:$0xff] %vm1270_vm8, %v1292_v6  ;;  %3277 = vmatmul.mubr.msk.f32.vlgmr.msra.gmra.mrb[8].mxu1 %vm1270_vm8, %v1292_v6  ;;  %v3611_v6 = vpack.c.bf16 %v1594_v5, %v1592_v3 }
 0x744   :  { %3570 = vmatpush3.bf16.msra.mxu1 %v3567_v1 }
 0x745   :  { %3572 = vmatprep.subr.bf16.mxu1 %v3571_v8 }
 0x748   :  { %3574 = vmatpush3.bf16.msra.mxu1 %v3571_v8  ;;  %v1591_v8 = vld [vmem:[#allocation14 + $0x60] sm:$0xff] }
 0x749   :  { %3576 = vmatprep.subr.bf16.mxu1 %v3575_v11  ;;  %v3613_v10 = vpack.c.bf16 %v1593_v9, %v1591_v8  ;;  %v1713_v8 = vld [vmem:[#allocation16 + $0x48] sm:$0xff]  ;;  %v1730_v9 = vld [vmem:[#allocation16 + $0xd0] sm:$0xff] }
 0x74c   :  { %3578 = vmatpush3.bf16.msra.mxu1 %v3575_v11  ;;  %v1596_v11 = vld [vmem:[#allocation14 + $0x88] sm:$0xff] }
 0x74d   :  { %3580 = vmatprep.subr.bf16.mxu1 %v3579_v16  ;;  %v3615_v15 = vpack.c.bf16 %v1598_v12, %v1596_v11 }
 0x750   :  { %3582 = vmatpush3.bf16.msra.mxu1 %v3579_v16  ;;  %v1595_v16 = vld [vmem:[#allocation14 + $0x80] sm:$0xff] }
 0x751   :  { %3584 = vmatprep.subr.bf16.mxu1 %v3583_v19  ;;  %v3617_v18 = vpack.c.bf16 %v1597_v17, %v1595_v16  ;;  %v1715_v16 = vld [vmem:[#allocation16 + $0x58] sm:$0xff]  ;;  %v1732_v17 = vld [vmem:[#allocation16 + $0xe0] sm:$0xff] }
 0x754   :  { %3586 = vmatpush3.bf16.msra.mxu1 %v3583_v19  ;;  %v1600_v19 = vld [vmem:[#allocation14 + $0xa8] sm:$0xff] }
 0x755   :  { %3588 = vmatprep.subr.bf16.mxu1 %v3587_v22  ;;  %v3619_v21 = vpack.c.bf16 %v1602_v20, %v1600_v19 }
 0x758   :  { %3590 = vmatpush3.bf16.msra.mxu1 %v3587_v22  ;;  %v1599_v22 = vld [vmem:[#allocation14 + $0xa0] sm:$0xff] }
 0x759   :  { %3592 = vmatprep.subr.bf16.mxu1 %v3591_v25 }
 0x75c   :  { %3594 = vmatpush3.bf16.msra.mxu1 %v3591_v25  ;;  %v3621_v25 = vpack.c.bf16 %v1601_v13, %v1599_v22 }
 0x75d   :  { %3596 = vmatprep.subr.bf16.mxu1 %v3595_v29 }
 0x760   :  { %3598 = vmatpush3.bf16.msra.mxu1 %v3595_v29  ;;  %v1605_v29 = vld [vmem:[#allocation14 + $0xd0] sm:$0xff] }
 0x761   :  { %3600 = vmatprep.subr.bf16.mxu1 %v3599_v45  ;;  %v1705_v45 = vld [vmem:[#allocation16 + $0x8] sm:$0xff] }
 0x762   :  { %v3633_v48 = vpack.c.bf16 %v1705_v45, %v1704_v43  ;;  %v1735_v45 = vld [vmem:[#allocation16 + $0xf8] sm:$0xff] }
 0x812   :  { %v1362_v30 = vpop.f32.mrb[6].mxu1 }
 0x813   :  { %v3273_v31 = vpop.f32.mrb[7].mxu1  ;;  %3311 = vmatprep.mubr.f32.mxu1 %v1362_v30  ;;  %v3623_v30 = vpack.c.bf16 %v1606_v26, %v1604_v24 }
 0x814   :  { %v1608_v31 = vld [vmem:[#allocation14 + $0xe8] sm:$0xff] }
 0x816   :  { %v1435_v32 = vpop.f32.mrb[8].mxu1 }
 0x817   :  { %v3278_v33 = vpop.f32.mrb[9].mxu1  ;;  %3312 = vmatmul.mubr.f32.vlgmr.msra.gmra.mrb[10].mxu1 %v1435_v32  ;;  %v1610_v32 = vld [vmem:[#allocation14 + $0xf8] sm:$0xff] }
 0x818   :  { %1687 = vmatprep.mubr.f32.mxu1 %v4411_v7  ;;  %3602 = vmatpush1.bf16.msra.mxu1 %v3601_v49  ;;  %v3625_v33 = vpack.c.bf16 %v1605_v29, %v1603_v23  ;;  %v3635_v49 = vpack.c.bf16 %v1723_v47, %v1722_v46  ;;  %v2856_v29 = vld [vmem:[#allocation11] ss:$0 sm:$0xff]  ;;  %v1718_v46 = vld [vmem:[#allocation16 + $0x70] sm:$0xff] }
 0x819   :  { %3604 = vmatprep.subr.bf16.mxu1 %v3603_v50  ;;  %v1706_v50 = vld [vmem:[#allocation16 + $0x10] sm:$0xff]  ;;  %v1719_v47 = vld [vmem:[#allocation16 + $0x78] sm:$0xff] }
 0x81c   :  { %3606 = vmatpush1.bf16.msra.mxu1 %v3605_v54 }
 0x8ea   :  { %v3313_v36 = vpop.f32.mrb[10].mxu1 }
 0x8eb   :  { %v1528_v4 = vpop.f32.mrb[11].mxu1  ;;  %v1534_v39 = vadd.f32 %v3313_v36, %v2855_v34  ;;  %v1607_v36 = vld [vmem:[#allocation14 + $0xe0] sm:$0xff] }
 0x8ec   :  { %v1529_v37 = vadd.f32 %v2855_v34, %v1528_v4  ;;  %v3627_v34 = vpack.c.bf16 %v1610_v32, %v1608_v31  ;;  %v1609_v4 = vld [vmem:[#allocation14 + $0xf0] sm:$0xff]  ;;  %v2857_v31 = vld [vmem:[#allocation13] ss:$0 sm:$0xff] }
 0x8ed   :  { %v4843_v41 = vadd.f32 %v1534_v39, %v4766_v14  ;;  %v1720_v39 = vld [vmem:[#allocation16 + $0x80] sm:$0xff] }
 0x8ee   :  { %v4839_v40 = vadd.f32 %v1529_v37, %v4763_v28  ;;  %v1588_v28 = vld [vmem:[#allocation14 + $0x48] sm:$0xff]  ;;  %v3629_v37 = vpack.c.bf16 %v1609_v4, %v1607_v36  ;;  %v3631_v0 = vpack.c.bf16 %v1721_v42, %v1720_v39  ;;  %v1716_v39 = vld [vmem:[#allocation16 + $0x60] sm:$0xff] }
 0x8ef   :  { %v3607_v14 = vpack.c.bf16 %v1590_v53, %v1588_v28  ;;  %v1725_v28 = vld [vmem:[#allocation16 + $0xa8] sm:$0xff]  ;;  %v3637_v53 = vpack.c.bf16 %v1707_v51, %v1706_v50 }
 0x8f0   :  { %1541 = vadd.xlane.f32.xlu1 %v4839_v40  ;;  %3632 = vmatprep.subr.bf16.mxu0 %v3631_v0  ;;  %v3639_v54 = vpack.c.bf16 %v1725_v28, %v1724_v52  ;;  %v1717_v42 = vld [vmem:[#allocation16 + $0x68] sm:$0xff]  ;;  %v1734_v0 = vld [vmem:[#allocation16 + $0xf0] sm:$0xff] }
 0x8f1   :  { %3608 = vmatprep.subr.bf16.mxu1 %v3607_v14  ;;  %3634 = vmatpush3.bf16.msra.mxu0 %v3633_v48  ;;  %v1708_v14 = vld [vmem:[#allocation16 + $0x20] sm:$0xff]  ;;  %v3657_v43 = vpack.c.bf16 %v1717_v42, %v1716_v39  ;;  %v3661_v48 = vpack.c.bf16 %v1719_v47, %v1718_v46  ;;  %v1870_v39 = vld [vmem:[#allocation19 + $0x50] sm:$0xff] }
 0x8f2   :  { %3610 = vmatpush1.bf16.msra.mxu1 %v3609_v57  ;;  %3636 = vmatprep.subr.bf16.mxu0 %v3635_v49  ;;  %v1727_v57 = vld [vmem:[#allocation16 + $0xb8] sm:$0xff]  ;;  %v1619_v49 = vsub.s32 1, %v4803_v27 }
 0x8f3   :  { %3612 = vmatprep.subr.bf16.mxu1 %v3611_v6  ;;  %v1712_v6 = vld [vmem:[#allocation16 + $0x40] sm:$0xff]  ;;  %v1874_v46 = vld [vmem:[#allocation19 + $0x70] sm:$0xff] }
 0x8f4   :  { %1543 = vadd.xlane.f32.xlu1 %v4843_v41  ;;  %v3649_v11 = vpack.c.bf16 %v1713_v8, %v1712_v6  ;;  %v1871_v42 = vld [vmem:[#allocation19 + $0x58] sm:$0xff] }
 0x8f5   :  { %3638 = vmatpush3.bf16.msra.mxu0 %v3637_v53  ;;  %v1875_v47 = vld [vmem:[#allocation19 + $0x78] sm:$0xff] }
 0x8f6   :  { %3614 = vmatpush1.bf16.msra.mxu1 %v3613_v10  ;;  %3640 = vmatprep.subr.bf16.mxu0 %v3639_v54  ;;  %v1731_v10 = vld [vmem:[#allocation16 + $0xd8] sm:$0xff] }
 0x8f7   :  { %3616 = vmatprep.subr.bf16.mxu1 %v3615_v15  ;;  %v3651_v12 = vpack.c.bf16 %v1731_v10, %v1730_v9  ;;  %v1714_v15 = vld [vmem:[#allocation16 + $0x50] sm:$0xff] }
 0x8f8   :  { %v3653_v19 = vpack.c.bf16 %v1715_v16, %v1714_v15  ;;  %v1860_v16 = vld [vmem:[#allocation19] sm:$0xff] }
 0x8fa   :  { %3618 = vmatpush1.bf16.msra.mxu1 %v3617_v18  ;;  %v1733_v18 = vld [vmem:[#allocation16 + $0xe8] sm:$0xff] }
 0x8fb   :  { %3620 = vmatprep.subr.bf16.mxu1 %v3619_v21  ;;  %v3655_v20 = vpack.c.bf16 %v1733_v18, %v1732_v17  ;;  %v1861_v17 = vld [vmem:[#allocation19 + $0x8] sm:$0xff]  ;;  %v1862_v18 = vld [vmem:[#allocation19 + $0x10] sm:$0xff] }
 0x8fe   :  { %3622 = vmatpush1.bf16.msra.mxu1 %v3621_v25 }
 0x8ff   :  { %3624 = vmatprep.subr.bf16.mxu1 %v3623_v30 }
 0x902   :  { %3626 = vmatpush1.bf16.msra.mxu1 %v3625_v33 }
 0x903   :  { %3628 = vmatprep.subr.bf16.mxu1 %v3627_v34 }
 0x906   :  { %3630 = vmatpush1.bf16.msra.mxu1 %v3629_v37 }
 0x97d   :  { %v1542_v58 = vpop.xlane.xlu1 %1541 }
 0x97e   :  { %v1545_v59 = vmul.f32 0.0078125, %v1542_v58  ;;  %v3641_v58 = vpack.c.bf16 %v1709_v55, %v1708_v14 }
 0x980   :  { %v4847_v60 = vsub.f32 %v4839_v40, %v1545_v59  ;;  %v3643_v59 = vpack.c.bf16 %v1727_v57, %v1726_v56  ;;  %3642 = vmatpush3.bf16.msra.mxu0 %v3641_v58 }
 0x981   :  { %v1544_v61 = vpop.xlane.xlu1 %1543 }
 0x982   :  { %v1546_v62 = vmul.f32 0.0078125, %v1544_v61  ;;  %v1549_v63 = vmul.f32 %v4847_v60, %v4847_v60  ;;  %v1710_v61 = vld [vmem:[#allocation16 + $0x30] sm:$0xff]  ;;  %3644 = vmatprep.subr.bf16.mxu0 %v3643_v59 }
 0x984   :  { %v4852_v1 = vsub.f32 %v4843_v41, %v1546_v62  ;;  %1551 = vadd.xlane.f32.xlu1 %v1549_v63  ;;  %v1711_v62 = vld [vmem:[#allocation16 + $0x38] sm:$0xff]  ;;  %v1728_v63 = vld [vmem:[#allocation16 + $0xc0] sm:$0xff] }
 0x985   :  { %v3645_v3 = vpack.c.bf16 %v1711_v62, %v1710_v61 }
 0x986   :  { %v1550_v2 = vmul.f32 %v4852_v1, %v4852_v1 }
 0x987   :  { %3646 = vmatpush3.bf16.msra.mxu0 %v3645_v3 }
 0x988   :  { %1553 = vadd.xlane.f32.xlu0 %v1550_v2  ;;  %v1729_v2 = vld [vmem:[#allocation16 + $0xc8] sm:$0xff] }
 0x989   :  { %v3647_v5 = vpack.c.bf16 %v1729_v2, %v1728_v63  ;;  %v2858_v2 = vld [vmem:[#allocation17] ss:$0 sm:$0xff] }
 0x98b   :  { %3648 = vmatprep.subr.bf16.mxu0 %v3647_v5 }
 0x98c   :  { %3650 = vmatpush3.bf16.msra.mxu0 %v3649_v11 }
 0x98d   :  { %3652 = vmatprep.subr.bf16.mxu0 %v3651_v12 }
 0x990   :  { %3654 = vmatpush3.bf16.msra.mxu0 %v3653_v19  ;;  %v3663_v19 = vpack.c.bf16 %v1861_v17, %v1860_v16 }
 0x991   :  { %3656 = vmatprep.subr.bf16.mxu0 %v3655_v20  ;;  %v1863_v20 = vld [vmem:[#allocation19 + $0x18] sm:$0xff] }
 0x992   :  { %3664 = vmatprep.subr.bf16.mxu1 %v3663_v19 }
 0x994   :  { %3658 = vmatpush3.bf16.msra.mxu0 %v3657_v43  ;;  %v3683_v43 = vpack.c.bf16 %v1871_v42, %v1870_v39  ;;  %v2276_v42 = vld [vmem:[#allocation20 + $0x30] sm:$0xff] }
 0xa11   :  { %v1552_v21 = vpop.xlane.xlu1 %1551 }
 0xa12   :  { %v1555_v22 = vmul.f32 0.0078125, %v1552_v21  ;;  %v3667_v21 = vpack.c.bf16 %v1863_v20, %v1862_v18 }
 0xa14   :  { %v1557_v13 = vadd.f32 1e-05, %v1555_v22 }
 0xa15   :  { %v1554_v24 = vpop.xlane.xlu0 %1553 }
 0xa16   :  { %3898 = vrsqrt.f32 %v1557_v13  ;;  %v1556_v25 = vmul.f32 0.0078125, %v1554_v24 }
 0xa18   :  { %v1558_v26 = vadd.f32 1e-05, %v1556_v25 }
 0xa1a   :  { %3900 = vrsqrt.f32 %v1558_v26 }
 0xa20   :  { %v3899_v23 = vpop.eup %3898 }
 0xa21   :  { %v1561_v30 = vmul.f32 %v3899_v23, %v4847_v60  ;;  %v3659_v60 = vpack.c.bf16 %v1735_v45, %v1734_v0  ;;  %v1872_v0 = vld [vmem:[#allocation19 + $0x60] sm:$0xff]  ;;  %v1873_v45 = vld [vmem:[#allocation19 + $0x68] sm:$0xff] }
 0xa23   :  { %v1569_v32 = vmul.f32 %v2856_v29, %v1561_v30  ;;  %3660 = vmatprep.subr.bf16.mxu0 %v3659_v60  ;;  %v1865_v30 = vld [vmem:[#allocation19 + $0x28] sm:$0xff]  ;;  %v3687_v60 = vpack.c.bf16 %v1873_v45, %v1872_v0  ;;  %v2278_v45 = vld [vmem:[#allocation20 + $0x40] sm:$0xff] }
 0xa24   :  { %v3901_v33 = vpop.eup %3900  ;;  %3662 = vmatpush3.bf16.msra.mxu0 %v3661_v48  ;;  %v3691_v48 = vpack.c.bf16 %v1875_v47, %v1874_v46  ;;  %v2280_v47 = vld [vmem:[#allocation20 + $0x50] sm:$0xff] }
 0xa25   :  { %v1577_v34 = vadd.f32 %v2857_v31, %v1569_v32  ;;  %v1562_v36 = vmul.f32 %v3901_v33, %v4852_v1  ;;  %3349 = vmatprep.subr.mxu0 %v4411_v7  ;;  %v1611_v1 = vld [vmem:[%s5004_s14] sm:$0x3]  ;;  %v1866_v32 = vld [vmem:[#allocation19 + $0x30] sm:$0xff]  ;;  %v1867_v33 = vld [vmem:[#allocation19 + $0x38] sm:$0xff] }
 0xa26   :  { %v1616_v50 = vrot.slane %v1611_v1, %v4808_v35  ;;  %v1620_v51 = vrot.slane %v1611_v1, %v1619_v49 }
 0xa27   :  { %1688 = vmatmul.mubr.f32.vlgmr.msra.gmra.mrb[12].mxu1 %v1577_v34  ;;  %v1570_v4 = vmul.f32 %v2856_v29, %v1562_v36  ;;  %v1864_v29 = vld [vmem:[#allocation19 + $0x20] sm:$0xff]  ;;  %v3675_v34 = vpack.c.bf16 %v1867_v33, %v1866_v32  ;;  %v2272_v32 = vld [vmem:[#allocation20 + $0x10] sm:$0xff] }
 0xa28   :  { %1693 = vmatprep.mubr.f32.mxu1 %v4411_v7  ;;  %3666 = vmatpush3.bf16.msra.mxu1 %v3663_v19  ;;  %v1868_v36 = vld [vmem:[#allocation19 + $0x40] sm:$0xff] }
 0xa29   :  { %v1578_v37 = vadd.f32 %v2857_v31, %v1570_v4  ;;  %3668 = vmatprep.subr.bf16.mxu1 %v3667_v21  ;;  %v3671_v31 = vpack.c.bf16 %v1865_v30, %v1864_v29  ;;  %v1869_v4 = vld [vmem:[#allocation19 + $0x48] sm:$0xff]  ;;  %v2270_v30 = vld [vmem:[#allocation20] sm:$0xff] }
 0xa2b   :  { %1694 = vmatmul.mubr.f32.gmra.mrb[14].mxu1 %v1578_v37  ;;  %v3679_v37 = vpack.c.bf16 %v1869_v4, %v1868_v36  ;;  %v2274_v4 = vld [vmem:[#allocation20 + $0x20] sm:$0xff] }
 0xa2c   :  { %3670 = vmatpush3.bf16.msra.mxu1 %v3667_v21 }
 0xa2d   :  { %3672 = vmatprep.subr.bf16.mxu1 %v3671_v31 }
 0xa30   :  { %3674 = vmatpush3.bf16.msra.mxu1 %v3671_v31  ;;  %v2271_v31 = vld [vmem:[#allocation20 + $0x8] sm:$0xff] }
 0xa31   :  { %3676 = vmatprep.subr.bf16.mxu1 %v3675_v34  ;;  %v3695_v33 = vpack.c.bf16 %v2271_v31, %v2270_v30 }
 0xa34   :  { %3678 = vmatpush3.bf16.msra.mxu1 %v3675_v34  ;;  %v2273_v34 = vld [vmem:[#allocation20 + $0x18] sm:$0xff] }
 0xa35   :  { %3680 = vmatprep.subr.bf16.mxu1 %v3679_v37  ;;  %v3699_v36 = vpack.c.bf16 %v2273_v34, %v2272_v32 }
 0xa38   :  { %3682 = vmatpush3.bf16.msra.mxu1 %v3679_v37  ;;  %v2275_v37 = vld [vmem:[#allocation20 + $0x28] sm:$0xff] }
 0xa39   :  { %3684 = vmatprep.subr.bf16.mxu1 %v3683_v43  ;;  %v3703_v39 = vpack.c.bf16 %v2275_v37, %v2274_v4  ;;  %v2423_v37 = vld [vmem:[#allocation22 + $0x68] sm:$0xff] }
 0xa3c   :  { %3686 = vmatpush3.bf16.msra.mxu1 %v3683_v43  ;;  %v2277_v43 = vld [vmem:[#allocation20 + $0x38] sm:$0xff] }
 0xa3d   :  { %3688 = vmatprep.subr.bf16.mxu1 %v3687_v60  ;;  %v3707_v0 = vpack.c.bf16 %v2277_v43, %v2276_v42  ;;  %v2422_v43 = vld [vmem:[#allocation22 + $0x60] sm:$0xff] }
 0xa40   :  { %3690 = vmatpush3.bf16.msra.mxu1 %v3687_v60  ;;  %v2279_v60 = vld [vmem:[#allocation20 + $0x48] sm:$0xff] }
 0xa41   :  { %3692 = vmatprep.subr.bf16.mxu1 %v3691_v48  ;;  %v3711_v46 = vpack.c.bf16 %v2279_v60, %v2278_v45  ;;  %v2427_v60 = vld [vmem:[#allocation22 + $0x88] sm:$0xff] }
 0xa44   :  { %3694 = vmatpush3.bf16.msra.mxu1 %v3691_v48  ;;  %v2281_v48 = vld [vmem:[#allocation20 + $0x58] sm:$0xff] }
 0xa45   :  { %3696 = vmatprep.subr.bf16.mxu1 %v3695_v33 }
 0xafa   :  { %v1689_v52 = vpop.f32.mrb[12].mxu1 }
 0xafb   :  { %v1690_v28 = vadd.f32 %v1689_v52, %v1616_v50  ;;  %v1691_v53 = vpop.f32.mrb[13].mxu1 }
 0xafc   :  { %v1692_v54 = vadd.f32 %v1691_v53, %v1620_v51 }
 0xafd   :  { %v1700_v56 = vmax.f32 %v1690_v28, 0.0 }
 0xafe   :  { %v1701_v14 = vmax.f32 %v1692_v54, 0.0  ;;  %v1695_v55 = vpop.f32.mrb[14].mxu1 }
 0xaff   :  { %v1696_v57 = vadd.f32 %v1695_v55, %v1616_v50  ;;  %v1697_v58 = vpop.f32.mrb[15].mxu1 }
 0xb00   :  { %v1698_v59 = vadd.f32 %v1697_v58, %v1620_v51  ;;  %1807 = vmatprep.mubr.f32.mxu0 %v1701_v14  ;;  %v2859_v14 = vld [vmem:[%s5005_s16] ss:$0 sm:$0xff] }
 0xb01   :  { %1808 = vmatmul.mubr.f32.vlgmr.msra.gmra.mrb[2].mxu0 %v1700_v56  ;;  %v1702_v62 = vmax.f32 %v1696_v57, 0.0  ;;  %v2860_v56 = vld [vmem:[%s5006_s24] ss:$0 sm:$0xff] }
 0xb02   :  { %v1703_v61 = vmax.f32 %v1698_v59, 0.0 }
 0xb04   :  { %1812 = vmatprep.mubr.f32.mxu0 %v1703_v61 }
 0xb05   :  { %1813 = vmatmul.mubr.f32.gmra.mrb[4].mxu0 %v1702_v62 }
 0xb06   :  { %3351 = vmatprep.mubr.msk.f32.mxu0 %vm4412_vm3, %v4411_v7 }
 0xbd4   :  { %v3005_v63 = vpop.f32.mrb[2].mxu0 }
 0xbd5   :  { %v3006_v3 = vpop.f32.mrb[3].mxu0 }
 0xbd6   :  { %v3007_v5 = vadd.f32 %v3006_v3, %v3005_v63 }
 0xbd8   :  { %v1810_v6 = vadd.f32 %v3007_v5, %v2858_v2  ;;  %v3008_v8 = vpop.f32.mrb[4].mxu0 }
 0xbd9   :  { %v3009_v9 = vpop.f32.mrb[5].mxu0 }
 0xbda   :  { %v3010_v10 = vadd.f32 %v3009_v9, %v3008_v8  ;;  %v4868_v11 = vadd.f32 %v1810_v6, %v4839_v40 }
 0xbdc   :  { %v1815_v12 = vadd.f32 %v3010_v10, %v2858_v2  ;;  %1822 = vadd.xlane.f32.xlu1 %v4868_v11  ;;  %v2861_v2 = vld [vmem:[%s5007_s22] ss:$0 sm:$0xff] }
 0xbde   :  { %v4872_v15 = vadd.f32 %v1815_v12, %v4843_v41 }
 0xbe0   :  { %1824 = vadd.xlane.f32.xlu0 %v4872_v15 }
 0xc69   :  { %v1823_v40 = vpop.xlane.xlu1 %1822 }
 0xc6a   :  { %v1826_v22 = vmul.f32 0.0078125, %v1823_v40 }
 0xc6c   :  { %v1828_v13 = vsub.f32 %v4868_v11, %v1826_v22 }
 0xc6d   :  { %v1825_v24 = vpop.xlane.xlu0 %1824 }
 0xc6e   :  { %v1827_v25 = vmul.f32 0.0078125, %v1825_v24  ;;  %v1830_v41 = vmul.f32 %v1828_v13, %v1828_v13 }
 0xc70   :  { %v1829_v26 = vsub.f32 %v4872_v15, %v1827_v25  ;;  %1832 = vadd.xlane.f32.xlu1 %v1830_v41 }
 0xc72   :  { %v1831_v23 = vmul.f32 %v1829_v26, %v1829_v26 }
 0xc74   :  { %1834 = vadd.xlane.f32.xlu0 %v1831_v23 }
 0xcfd   :  { %v1833_v1 = vpop.xlane.xlu1 %1832 }
 0xcfe   :  { %v1836_v50 = vmul.f32 0.0078125, %v1833_v1  ;;  %v3715_v1 = vpack.c.bf16 %v2281_v48, %v2280_v47  ;;  %v2426_v48 = vld [vmem:[#allocation22 + $0x80] sm:$0xff] }
 0xd00   :  { %v1838_v51 = vadd.f32 1e-05, %v1836_v50  ;;  %v2282_v50 = vld [vmem:[#allocation20 + $0x60] sm:$0xff] }
 0xd01   :  { %v1835_v52 = vpop.xlane.xlu0 %1834 }
 0xd02   :  { %3902 = vrsqrt.f32 %v1838_v51  ;;  %v1837_v28 = vmul.f32 0.0078125, %v1835_v52  ;;  %v2283_v51 = vld [vmem:[#allocation20 + $0x68] sm:$0xff] }
 0xd03   :  { %v3719_v52 = vpack.c.bf16 %v2283_v51, %v2282_v50  ;;  %v2431_v50 = vld [vmem:[#allocation22 + $0xa8] sm:$0xff] }
 0xd04   :  { %v1839_v53 = vadd.f32 1e-05, %v1837_v28 }
 0xd06   :  { %3904 = vrsqrt.f32 %v1839_v53 }
 0xd0c   :  { %v3903_v54 = vpop.eup %3902 }
 0xd0d   :  { %v1842_v55 = vmul.f32 %v3903_v54, %v1828_v13 }
 0xd0f   :  { %v1850_v57 = vmul.f32 %v2859_v14, %v1842_v55 }
 0xd10   :  { %v3905_v58 = vpop.eup %3904 }
 0xd11   :  { %v1843_v59 = vmul.f32 %v3905_v58, %v1829_v26  ;;  %v1858_v61 = vadd.f32 %v2860_v56, %v1850_v57  ;;  %v2284_v57 = vld [vmem:[#allocation20 + $0x70] sm:$0xff]  ;;  %v2285_v58 = vld [vmem:[#allocation20 + $0x78] sm:$0xff] }
 0xd13   :  { %v1851_v62 = vmul.f32 %v2859_v14, %v1843_v59  ;;  %3346 = vmatprep.mubr.f32.mxu1 %v1858_v61  ;;  %v3723_v59 = vpack.c.bf16 %v2285_v58, %v2284_v57  ;;  %v2434_v58 = vld [vmem:[#allocation22 + $0xc0] sm:$0xff] }
 0xd15   :  { %v1859_v63 = vadd.f32 %v2860_v56, %v1851_v62 }
 0xd17   :  { %3347 = vmatmul.mubr.f32.vlgmr.msra.gmra.mrb[16].mxu1 %v1859_v63 }
 0xd18   :  { %3698 = vmatpush3.bf16.msra.mxu1 %v3695_v33 }
 0xd19   :  { %3700 = vmatprep.subr.bf16.mxu1 %v3699_v36 }
 0xd1c   :  { %3702 = vmatpush3.bf16.msra.mxu1 %v3699_v36 }
 0xd1d   :  { %3704 = vmatprep.subr.bf16.mxu1 %v3703_v39 }
 0xd20   :  { %3706 = vmatpush3.bf16.msra.mxu1 %v3703_v39  ;;  %v2425_v39 = vld [vmem:[#allocation22 + $0x78] sm:$0xff] }
 0xd21   :  { %3708 = vmatprep.subr.bf16.mxu1 %v3707_v0  ;;  %v3739_v42 = vpack.c.bf16 %v2425_v39, %v2423_v37  ;;  %v2543_v39 = vld [vmem:[#allocation23 + $0x40] sm:$0xff] }
 0xd24   :  { %3710 = vmatpush3.bf16.msra.mxu1 %v3707_v0  ;;  %v2424_v0 = vld [vmem:[#allocation22 + $0x70] sm:$0xff] }
 0xd25   :  { %3712 = vmatprep.subr.bf16.mxu1 %v3711_v46  ;;  %v3741_v45 = vpack.c.bf16 %v2424_v0, %v2422_v43  ;;  %v2561_v43 = vld [vmem:[#allocation23 + $0xd0] sm:$0xff]  ;;  %v2562_v0 = vld [vmem:[#allocation23 + $0xd8] sm:$0xff] }
 0xd28   :  { %3714 = vmatpush3.bf16.msra.mxu1 %v3711_v46  ;;  %v2429_v46 = vld [vmem:[#allocation22 + $0x98] sm:$0xff] }
 0xd29   :  { %3716 = vmatprep.subr.bf16.mxu1 %v3715_v1  ;;  %v3743_v47 = vpack.c.bf16 %v2429_v46, %v2427_v60  ;;  %v3779_v60 = vpack.c.bf16 %v2562_v0, %v2561_v43  ;;  %v2545_v46 = vld [vmem:[#allocation23 + $0x50] sm:$0xff] }
 0xd2c   :  { %3718 = vmatpush3.bf16.msra.mxu1 %v3715_v1  ;;  %v2428_v1 = vld [vmem:[#allocation22 + $0x90] sm:$0xff] }
 0xd2d   :  { %3720 = vmatprep.subr.bf16.mxu1 %v3719_v52  ;;  %v3745_v51 = vpack.c.bf16 %v2428_v1, %v2426_v48  ;;  %v2563_v48 = vld [vmem:[#allocation23 + $0xe0] sm:$0xff]  ;;  %v2564_v1 = vld [vmem:[#allocation23 + $0xe8] sm:$0xff] }
 0xd30   :  { %3722 = vmatpush3.bf16.msra.mxu1 %v3719_v52  ;;  %v2433_v52 = vld [vmem:[#allocation22 + $0xb8] sm:$0xff] }
 0xd31   :  { %3724 = vmatprep.subr.bf16.mxu1 %v3723_v59 }
 0xd34   :  { %3726 = vmatpush3.bf16.msra.mxu1 %v3723_v59  ;;  %v2436_v59 = vld [vmem:[#allocation22 + $0xd0] sm:$0xff] }
 0xdea   :  { %v3348_v3 = vpop.f32.mrb[16].mxu1 }
 0xdeb   :  { %v1949_v5 = vpop.f32.mrb[17].mxu1  ;;  %v4880_v8 = vadd.f32 %v3348_v3, %v2861_v2  ;;  %v2864_v3 = vld [vmem:[%s5008_s29] ss:$0 sm:$0xff] }
 0xdec   :  { %v1950_v6 = vadd.f32 %v2861_v2, %v1949_v5 }
 0xded   :  { %v1959_v10 = vmul.f32 0.088388346, %v4880_v8 }
 0xdee   :  { %v1958_v9 = vmul.f32 0.088388346, %v1950_v6 }
 0xdf0   :  { %3350 = vmatpush3.xpose.msra.mxu0 %v1958_v9 }
 0xdf1   :  { %3354 = vmatprep.subr.mxu0 %v4411_v7 }
 0xdf3   :  { %3352 = vmatmul.mubr.f32.vlgmr.msra.gmra.mrb[6].mxu0 %v1950_v6 }
 0xdf4   :  { %3355 = vmatpush3.xpose.msra.mxu0 %v1959_v10  ;;  %3356 = vmatprep.mubr.msk.f32.mxu0 %vm4412_vm3, %v4411_v7 }
 0xdf5   :  { %3359 = vmatprep.subr.mxu0 %v4411_v7 }
 0xdf7   :  { %3357 = vmatmul.mubr.f32.vlgmr.msra.gmra.mrb[8].mxu0 %v4880_v8 }
 0xdf8   :  { %3360 = vmatpush3.msra.mxu0 %v1950_v6  ;;  %3361 = vmatprep.mubr.msk.f32.mxu0 %vm4412_vm3, %v4411_v7 }
 0xdf9   :  { %3364 = vmatprep.subr.mxu0 %v4411_v7 }
 0xec6   :  { %v2026_v12 = vpop.f32.mrb[6].mxu0 }
 0xec7   :  { %v2100_v16 = vsel %vm4813_vm7, -1e+09, %v2026_v12  ;;  %v3353_v17 = vpop.f32.mrb[7].mxu0 }
 0xec8   :  { %v2102_v18 = vsel %vm1270_vm8, %v2100_v16, -inf  ;;  %v2413_v17 = vld [vmem:[#allocation22 + $0x18] sm:$0xff] }
 0xec9   :  { %2103 = vmax.xlane.f32.xlu1 %v2102_v18  ;;  %v2410_v18 = vld [vmem:[#allocation22] sm:$0xff] }
 0xeca   :  { %v2096_v19 = vpop.f32.mrb[8].mxu0 }
 0xecb   :  { %v2101_v20 = vsel %vm4821_vm9, -1e+09, %v2096_v19  ;;  %v3358_v21 = vpop.f32.mrb[9].mxu0 }
 0xecc   :  { %v2105_v40 = vsel %vm1270_vm8, %v2101_v20, -inf  ;;  %v2415_v21 = vld [vmem:[#allocation22 + $0x28] sm:$0xff] }
 0xecd   :  { %2106 = vmax.xlane.f32.xlu0 %v2105_v40  ;;  %v2417_v40 = vld [vmem:[#allocation22 + $0x38] sm:$0xff] }
 0xf56   :  { %v2104_v22 = vpop.xlane.xlu1 %2103 }
 0xf57   :  { %v2108_v13 = vsub.f32 %v2100_v16, %v2104_v22  ;;  %v2411_v16 = vld [vmem:[#allocation22 + $0x8] sm:$0xff] }
 0xf58   :  { %v3727_v19 = vpack.c.bf16 %v2413_v17, %v2411_v16  ;;  %v2535_v16 = vld [vmem:[#allocation23] sm:$0xff] }
 0xf59   :  { %v2110_v24 = vmul.f32 1.442695, %v2108_v13  ;;  %v3731_v13 = vpack.c.bf16 %v2417_v40, %v2415_v21 }
 0xf5a   :  { %v2107_v25 = vpop.xlane.xlu0 %2106 }
 0xf5b   :  { %3906 = vpow2.f32 %v2110_v24  ;;  %v2109_v41 = vsub.f32 %v2101_v20, %v2107_v25  ;;  %v2412_v20 = vld [vmem:[#allocation22 + $0x10] sm:$0xff]  ;;  %v2414_v24 = vld [vmem:[#allocation22 + $0x20] sm:$0xff] }
 0xf5c   :  { %v3729_v22 = vpack.c.bf16 %v2412_v20, %v2410_v18  ;;  %v2416_v25 = vld [vmem:[#allocation22 + $0x30] sm:$0xff]  ;;  %v2536_v18 = vld [vmem:[#allocation23 + $0x8] sm:$0xff]  ;;  %v2554_v20 = vld [vmem:[#allocation23 + $0x98] sm:$0xff] }
 0xf5d   :  { %v2112_v38 = vmul.f32 1.442695, %v2109_v41  ;;  %v2421_v41 = vld [vmem:[#allocation22 + $0x58] sm:$0xff]  ;;  %v3761_v21 = vpack.c.bf16 %v2536_v18, %v2535_v16 }
 0xf5e   :  { %v2550_v18 = vld [vmem:[#allocation23 + $0x78] sm:$0xff] }
 0xf5f   :  { %3908 = vpow2.f32 %v2112_v38 }
 0xf65   :  { %v3907_v26 = vpop.eup %3906 }
 0xf66   :  { %v2114_v23 = vsel %vm1270_vm8, %v3907_v26, 0.0 }
 0xf67   :  { %2115 = vadd.xlane.f32.xlu1 %v2114_v23  ;;  %v2420_v23 = vld [vmem:[#allocation22 + $0x50] sm:$0xff] }
 0xf69   :  { %v3909_v29 = vpop.eup %3908 }
 0xf6a   :  { %v2117_v44 = vsel %vm1270_vm8, %v3909_v29, 0.0 }
 0xf6b   :  { %2118 = vadd.xlane.f32.xlu0 %v2117_v44 }
 0xff4   :  { %v2116_v28 = vpop.xlane.xlu1 %2115 }
 0xff5   :  { %3910 = vrcp.f32 %v2116_v28  ;;  %v2430_v28 = vld [vmem:[#allocation22 + $0xa0] sm:$0xff] }
 0xff8   :  { %v2119_v53 = vpop.xlane.xlu0 %2118 }
 0xff9   :  { %3912 = vrcp.f32 %v2119_v53  ;;  %v2432_v53 = vld [vmem:[#allocation22 + $0xb0] sm:$0xff] }
 0xfff   :  { %v3911_v54 = vpop.eup %3910 }
0x1000   :  { %v2122_v14 = vmul.f32 %v3911_v54, %v3907_v26  ;;  %v2418_v26 = vld [vmem:[#allocation22 + $0x40] sm:$0xff]  ;;  %v3747_v54 = vpack.c.bf16 %v2433_v52, %v2431_v50 }
0x1002   :  { %2754 = vst.msk [vmem:[#allocation31] sm:$0xff] %vm1270_vm8, %v2122_v14  ;;  %3362 = vmatmul.mubr.msk.f32.vlgmr.msra.gmra.mrb[10].mxu0 %vm1270_vm8, %v2122_v14  ;;  %v2435_v14 = vld [vmem:[#allocation22 + $0xc8] sm:$0xff] }
0x1003   :  { %v3913_v55 = vpop.eup %3912  ;;  %3365 = vmatpush3.msra.mxu0 %v4880_v8  ;;  %3366 = vmatprep.mubr.msk.f32.mxu0 %vm4412_vm3, %v4411_v7 }
0x1004   :  { %v2123_v56 = vmul.f32 %v3913_v55, %v3909_v29  ;;  %3728 = vmatprep.subr.bf16.mxu0 %v3727_v19  ;;  %v3737_v29 = vpack.c.bf16 %v2420_v23, %v2418_v26  ;;  %v2437_v55 = vld [vmem:[#allocation22 + $0xd8] sm:$0xff]  ;;  %v2553_v19 = vld [vmem:[#allocation23 + $0x90] sm:$0xff] }
0x1005   :  { %v3751_v57 = vpack.c.bf16 %v2437_v55, %v2435_v14  ;;  %v3763_v40 = vpack.c.bf16 %v2554_v20, %v2553_v19  ;;  %v2557_v26 = vld [vmem:[#allocation23 + $0xb0] sm:$0xff]  ;;  %v2558_v23 = vld [vmem:[#allocation23 + $0xb8] sm:$0xff]  ;;  %v2651_v20 = vld [vmem:[%s5011_s1] sm:$0xff] }
0x1006   :  { %2755 = vst.msk [vmem:[#allocation31 + $0x8] sm:$0xff] %vm1270_vm8, %v2123_v56  ;;  %3367 = vmatmul.mubr.msk.f32.vlgmr.msra.gmra.mrb[12].mxu0 %vm1270_vm8, %v2123_v56  ;;  %v3749_v56 = vpack.c.bf16 %v2432_v53, %v2430_v28 }
0x1007   :  { %2518 = vmatprep.mubr.f32.mxu0 %v4411_v7  ;;  %3730 = vmatpush1.bf16.msra.mxu0 %v3729_v22  ;;  %v2537_v22 = vld [vmem:[#allocation23 + $0x10] sm:$0xff] }
0x1008   :  { %3732 = vmatprep.subr.bf16.mxu0 %v3731_v13  ;;  %v2538_v13 = vld [vmem:[#allocation23 + $0x18] sm:$0xff] }
0x10d5   :  { %v2193_v61 = vpop.f32.mrb[10].mxu0 }
0x10d6   :  { %v3363_v62 = vpop.f32.mrb[11].mxu0  ;;  %3401 = vmatprep.mubr.f32.mxu1 %v2193_v61  ;;  %v2439_v61 = vld [vmem:[#allocation22 + $0xe8] sm:$0xff] }
0x10d7   :  { %v2441_v62 = vld [vmem:[#allocation22 + $0xf8] sm:$0xff] }
0x10d9   :  { %v2266_v63 = vpop.f32.mrb[12].mxu0 }
0x10da   :  { %v3368_v2 = vpop.f32.mrb[13].mxu0  ;;  %3402 = vmatmul.mubr.f32.vlgmr.msra.gmra.mrb[18].mxu1 %v2266_v63  ;;  %v3753_v63 = vpack.c.bf16 %v2436_v59, %v2434_v58  ;;  %v2865_v58 = vld [vmem:[%s5009_s23] ss:$0 sm:$0xff] }
0x10db   :  { %v3755_v2 = vpack.c.bf16 %v2441_v62, %v2439_v61  ;;  %v2866_v62 = vld [vmem:[%s5010_s26] ss:$0 sm:$0xff] }
0x11ad   :  { %v3403_v5 = vpop.f32.mrb[18].mxu1 }
0x11ae   :  { %v2365_v6 = vadd.f32 %v3403_v5, %v2864_v3  ;;  %v2359_v8 = vpop.f32.mrb[19].mxu1  ;;  %v2440_v5 = vld [vmem:[#allocation22 + $0xf0] sm:$0xff] }
0x11af   :  { %v2360_v9 = vadd.f32 %v2864_v3, %v2359_v8  ;;  %v2438_v3 = vld [vmem:[#allocation22 + $0xe0] sm:$0xff] }
0x11b0   :  { %v4909_v10 = vadd.f32 %v2365_v6, %v4872_v15  ;;  %v2419_v15 = vld [vmem:[#allocation22 + $0x48] sm:$0xff]  ;;  %v3757_v6 = vpack.c.bf16 %v2440_v5, %v2438_v3  ;;  %v2551_v8 = vld [vmem:[#allocation23 + $0x80] sm:$0xff] }
0x11b1   :  { %v4912_v12 = vadd.f32 %v2360_v9, %v4868_v11  ;;  %v3733_v11 = vpack.c.bf16 %v2416_v25, %v2414_v24  ;;  %v3735_v38 = vpack.c.bf16 %v2421_v41, %v2419_v15  ;;  %v2552_v9 = vld [vmem:[#allocation23 + $0x88] sm:$0xff]  ;;  %v2555_v24 = vld [vmem:[#allocation23 + $0xa0] sm:$0xff]  ;;  %v3765_v15 = vpack.c.bf16 %v2538_v13, %v2537_v22 }
0x11b2   :  { %2374 = vadd.xlane.f32.xlu0 %v4909_v10  ;;  %v3759_v17 = vpack.c.bf16 %v2552_v9, %v2551_v8  ;;  %v2556_v25 = vld [vmem:[#allocation23 + $0xa8] sm:$0xff]  ;;  %v2566_v9 = vld [vmem:[#allocation23 + $0xf8] sm:$0xff] }
0x11b3   :  { %2372 = vadd.xlane.f32.xlu1 %v4912_v12  ;;  %3734 = vmatpush1.bf16.msra.mxu0 %v3733_v11  ;;  %v3767_v41 = vpack.c.bf16 %v2556_v25, %v2555_v24  ;;  %v2539_v11 = vld [vmem:[#allocation23 + $0x20] sm:$0xff]  ;;  %v2548_v8 = vld [vmem:[#allocation23 + $0x68] sm:$0xff] }
0x11b4   :  { %3736 = vmatprep.subr.bf16.mxu0 %v3735_v38  ;;  %3760 = vmatprep.subr.bf16.mxu1 %v3759_v17  ;;  %v2540_v38 = vld [vmem:[#allocation23 + $0x28] sm:$0xff]  ;;  %v2549_v17 = vld [vmem:[#allocation23 + $0x70] sm:$0xff]  ;;  %v2654_v13 = vld [vmem:[%s5011_s1 + $0x18] sm:$0xff] }
0x11b5   :  { %3762 = vmatpush3.bf16.msra.mxu1 %v3761_v21  ;;  %v3789_v19 = vpack.c.bf16 %v2550_v18, %v2549_v17  ;;  %v2652_v21 = vld [vmem:[%s5011_s1 + $0x8] sm:$0xff]  ;;  %v2655_v25 = vld [vmem:[%s5011_s1 + $0x20] sm:$0xff] }
0x11b6   :  { %3764 = vmatprep.subr.bf16.mxu1 %v3763_v40  ;;  %v4414_v40 = vmov 0.0|0.0   ;;  %v3792_v22 = vpack.c.bf16 %v2652_v21, %v2651_v20 }
0x11b7   :  { %3738 = vmatpush1.bf16.msra.mxu0 %v3737_v29  ;;  %v3769_v29 = vpack.c.bf16 %v2540_v38, %v2539_v11  ;;  %v2657_v11 = vld [vmem:[%s5011_s1 + $0x30] sm:$0xff]  ;;  %v2658_v38 = vld [vmem:[%s5011_s1 + $0x38] sm:$0xff] }
0x11b8   :  { %3740 = vmatprep.subr.bf16.mxu0 %v3739_v42  ;;  %v2544_v42 = vld [vmem:[#allocation23 + $0x48] sm:$0xff] }
0x11b9   :  { %3766 = vmatpush3.bf16.msra.mxu1 %v3765_v15  ;;  %v2656_v15 = vld [vmem:[%s5011_s1 + $0x28] sm:$0xff] }
0x11ba   :  { %3768 = vmatprep.subr.bf16.mxu1 %v3767_v41  ;;  %v3798_v41 = vpack.c.bf16 %v2656_v15, %v2655_v25 }
0x11bb   :  { %3742 = vmatpush1.bf16.msra.mxu0 %v3741_v45  ;;  %v3777_v45 = vpack.c.bf16 %v2544_v42, %v2543_v39 }
0x11bc   :  { %3744 = vmatprep.subr.bf16.mxu0 %v3743_v47  ;;  %v2546_v47 = vld [vmem:[#allocation23 + $0x58] sm:$0xff] }
0x11bd   :  { %3770 = vmatpush3.bf16.msra.mxu1 %v3769_v29  ;;  %v3781_v50 = vpack.c.bf16 %v2546_v47, %v2545_v46  ;;  %v2661_v46 = vld [vmem:[%s5011_s1 + $0x50] sm:$0xff]  ;;  %v2662_v47 = vld [vmem:[%s5011_s1 + $0x58] sm:$0xff] }
0x11bf   :  { %3746 = vmatpush1.bf16.msra.mxu0 %v3745_v51  ;;  %v3783_v51 = vpack.c.bf16 %v2564_v1, %v2563_v48  ;;  %v3807_v48 = vpack.c.bf16 %v2662_v47, %v2661_v46  ;;  %v2663_v1 = vld [vmem:[%s5011_s1 + $0x60] sm:$0xff] }
0x11c0   :  { %3748 = vmatprep.subr.bf16.mxu0 %v3747_v54 }
0x11c3   :  { %3750 = vmatpush1.bf16.msra.mxu0 %v3749_v56 }
0x11c4   :  { %3752 = vmatprep.subr.bf16.mxu0 %v3751_v57 }
0x11c7   :  { %3754 = vmatpush1.bf16.msra.mxu0 %v3753_v63 }
0x11c8   :  { %3756 = vmatprep.subr.bf16.mxu0 %v3755_v2 }
0x11cb   :  { %3758 = vmatpush1.bf16.msra.mxu0 %v3757_v6  ;;  %v2547_v6 = vld [vmem:[#allocation23 + $0x60] sm:$0xff] }
0x11cc   :  { %3791 = vmatprep.subr.bf16.mxu0 %v4414_v40 }
0x123f   :  { %v2375_v44 = vpop.xlane.xlu0 %2374 }
0x1240   :  { %v2377_v30 = vmul.f32 0.0078125, %v2375_v44  ;;  %v2373_v31 = vpop.xlane.xlu1 %2372  ;;  %v3771_v44 = vpack.c.bf16 %v2558_v23, %v2557_v26  ;;  %v3801_v26 = vpack.c.bf16 %v2658_v38, %v2657_v11  ;;  %v2442_v23 = vld [vmem:[%s5012_s12] sm:$0x3] }
0x1241   :  { %v2376_v32 = vmul.f32 0.0078125, %v2373_v31  ;;  %v2542_v31 = vld [vmem:[#allocation23 + $0x38] sm:$0xff]  ;;  %v2447_v29 = vrot.slane %v2442_v23, %v4808_v35 }
0x1242   :  { %v4917_v33 = vsub.f32 %v4909_v10, %v2377_v30  ;;  %v2541_v30 = vld [vmem:[#allocation23 + $0x30] sm:$0xff]  ;;  %3772 = vmatprep.subr.bf16.mxu1 %v3771_v44  ;;  %v2451_v44 = vrot.slane %v2442_v23, %v1619_v49  ;;  %v2659_v49 = vld [vmem:[%s5011_s1 + $0x40] sm:$0xff] }
0x1243   :  { %v4920_v34 = vsub.f32 %v4912_v12, %v2376_v32  ;;  %v2559_v32 = vld [vmem:[#allocation23 + $0xc0] sm:$0xff] }
0x1244   :  { %v2381_v36 = vmul.f32 %v4917_v33, %v4917_v33 }
0x1245   :  { %v2380_v4 = vmul.f32 %v4920_v34, %v4920_v34 }
0x1246   :  { %2384 = vadd.xlane.f32.xlu0 %v2381_v36  ;;  %v2560_v36 = vld [vmem:[#allocation23 + $0xc8] sm:$0xff] }
0x1247   :  { %2382 = vadd.xlane.f32.xlu1 %v2380_v4  ;;  %v3773_v4 = vpack.c.bf16 %v2542_v31, %v2541_v30  ;;  %v3775_v37 = vpack.c.bf16 %v2560_v36, %v2559_v32 }
0x1249   :  { %3774 = vmatpush3.bf16.msra.mxu1 %v3773_v4 }
0x124a   :  { %3776 = vmatprep.subr.bf16.mxu1 %v3775_v37 }
0x124d   :  { %3778 = vmatpush3.bf16.msra.mxu1 %v3777_v45  ;;  %v2660_v45 = vld [vmem:[%s5011_s1 + $0x48] sm:$0xff] }
0x124e   :  { %3780 = vmatprep.subr.bf16.mxu1 %v3779_v60  ;;  %v3804_v60 = vpack.c.bf16 %v2660_v45, %v2659_v49 }
0x1251   :  { %3782 = vmatpush3.bf16.msra.mxu1 %v3781_v50  ;;  %v2664_v50 = vld [vmem:[%s5011_s1 + $0x68] sm:$0xff] }
0x1252   :  { %3784 = vmatprep.subr.bf16.mxu1 %v3783_v51  ;;  %v3810_v51 = vpack.c.bf16 %v2664_v50, %v2663_v1 }
0x12d3   :  { %v2385_v52 = vpop.xlane.xlu0 %2384 }
0x12d4   :  { %v2387_v28 = vmul.f32 0.0078125, %v2385_v52  ;;  %v2383_v53 = vpop.xlane.xlu1 %2382  ;;  %v2665_v52 = vld [vmem:[%s5011_s1 + $0x70] sm:$0xff] }
0x12d5   :  { %v2386_v54 = vmul.f32 0.0078125, %v2383_v53 }
0x12d6   :  { %v2389_v14 = vadd.f32 1e-05, %v2387_v28  ;;  %v2666_v28 = vld [vmem:[%s5011_s1 + $0x78] sm:$0xff] }
0x12d7   :  { %v2388_v55 = vadd.f32 1e-05, %v2386_v54  ;;  %v3813_v53 = vpack.c.bf16 %v2666_v28, %v2665_v52 }
0x12d8   :  { %3914 = vrsqrt.f32 %v2389_v14 }
0x12d9   :  { %3916 = vrsqrt.f32 %v2388_v55 }
0x12e2   :  { %v3915_v56 = vpop.eup %3914 }
0x12e3   :  { %v3917_v57 = vpop.eup %3916  ;;  %v2393_v61 = vmul.f32 %v3915_v56, %v4917_v33  ;;  %v2565_v33 = vld [vmem:[#allocation23 + $0xf0] sm:$0xff] }
0x12e4   :  { %v2392_v59 = vmul.f32 %v3917_v57, %v4920_v34  ;;  %v3785_v34 = vpack.c.bf16 %v2548_v8, %v2547_v6  ;;  %v3787_v16 = vpack.c.bf16 %v2566_v9, %v2565_v33  ;;  %v2867_v57 = vld [vmem:[#allocation25] ss:$0 sm:$0xff] }
0x12e5   :  { %v2401_v3 = vmul.f32 %v2865_v58, %v2393_v61 }
0x12e6   :  { %v2400_v63 = vmul.f32 %v2865_v58, %v2392_v59  ;;  %3786 = vmatpush3.bf16.msra.mxu1 %v3785_v34 }
0x12e7   :  { %v2409_v5 = vadd.f32 %v2866_v62, %v2401_v3  ;;  %3788 = vmatprep.subr.bf16.mxu1 %v3787_v16 }
0x12e8   :  { %v2408_v2 = vadd.f32 %v2866_v62, %v2400_v63 }
0x12ea   :  { %2519 = vmatmul.mubr.f32.vlgmr.msra.gmra.mrb[14].mxu0 %v2408_v2  ;;  %3790 = vmatpush3.bf16.msra.mxu1 %v3789_v19 }
0x12eb   :  { %2524 = vmatprep.mubr.f32.mxu0 %v4411_v7  ;;  %3793 = vmatpush3.bf16.msra.mxu0 %v3792_v22 }
0x12ec   :  { %3794 = vmatprep.subr.bf16.mxu0 %v4414_v40 }
0x12ee   :  { %2525 = vmatmul.mubr.f32.gmra.mrb[16].mxu0 %v2409_v5 }
0x12ef   :  { %3436 = vmatprep.mubr.msk.f32.mxu0 %vm4412_vm3, %v4411_v7  ;;  %v2653_v7 = vld [vmem:[%s5011_s1 + $0x10] sm:$0xff] }
0x12f0   :  { %v3795_v24 = vpack.c.bf16 %v2654_v13, %v2653_v7 }
0x12f2   :  { %3796 = vmatpush3.bf16.msra.mxu0 %v3795_v24 }
0x12f3   :  { %3797 = vmatprep.subr.bf16.mxu0 %v4414_v40 }
0x12f6   :  { %3799 = vmatpush3.bf16.msra.mxu0 %v3798_v41 }
0x12f7   :  { %3800 = vmatprep.subr.bf16.mxu0 %v4414_v40 }
0x12fa   :  { %3802 = vmatpush3.bf16.msra.mxu0 %v3801_v26 }
0x12fb   :  { %3803 = vmatprep.subr.bf16.mxu0 %v4414_v40 }
0x12fe   :  { %3805 = vmatpush3.bf16.msra.mxu0 %v3804_v60 }
0x12ff   :  { %3806 = vmatprep.subr.bf16.mxu0 %v4414_v40 }
0x1302   :  { %3808 = vmatpush3.bf16.msra.mxu0 %v3807_v48 }
0x1303   :  { %3809 = vmatprep.subr.bf16.mxu0 %v4414_v40 }
0x1306   :  { %3811 = vmatpush3.bf16.msra.mxu0 %v3810_v51 }
0x1307   :  { %3812 = vmatprep.subr.bf16.mxu0 %v4414_v40 }
0x130a   :  { %3814 = vmatpush3.bf16.msra.mxu0 %v3813_v53 }
0x13bd   :  { %v2520_v30 = vpop.f32.mrb[14].mxu0 }
0x13be   :  { %v2521_v31 = vadd.f32 %v2520_v30, %v2447_v29  ;;  %v2522_v32 = vpop.f32.mrb[15].mxu0 }
0x13bf   :  { %v2523_v36 = vadd.f32 %v2522_v32, %v2451_v44 }
0x13c0   :  { %v2531_v39 = vmax.f32 %v2521_v31, 0.0 }
0x13c1   :  { %v2532_v4 = vmax.f32 %v2523_v36, 0.0  ;;  %v2526_v37 = vpop.f32.mrb[16].mxu0 }
0x13c2   :  { %v2527_v42 = vadd.f32 %v2526_v37, %v2447_v29  ;;  %v2528_v43 = vpop.f32.mrb[17].mxu0 }
0x13c3   :  { %v2529_v0 = vadd.f32 %v2528_v43, %v2451_v44  ;;  %2638 = vmatprep.mubr.f32.mxu1 %v2532_v4 }
0x13c4   :  { %2639 = vmatmul.mubr.f32.vlgmr.msra.gmra.mrb[20].mxu1 %v2531_v39  ;;  %v2533_v35 = vmax.f32 %v2527_v42, 0.0 }
0x13c5   :  { %v2534_v27 = vmax.f32 %v2529_v0, 0.0 }
0x13c7   :  { %2643 = vmatprep.mubr.f32.mxu1 %v2534_v27 }
0x13c8   :  { %2644 = vmatmul.mubr.f32.gmra.mrb[22].mxu1 %v2533_v35 }
0x1497   :  { %v3087_v54 = vpop.f32.mrb[20].mxu1 }
0x1498   :  { %v3088_v14 = vpop.f32.mrb[21].mxu1 }
0x1499   :  { %v3089_v55 = vadd.f32 %v3088_v14, %v3087_v54 }
0x149b   :  { %v3090_v56 = vpop.f32.mrb[22].mxu1  ;;  %v2641_v61 = vadd.f32 %v3089_v55, %v2867_v57 }
0x149c   :  { %v3091_v58 = vpop.f32.mrb[23].mxu1 }
0x149d   :  { %v3092_v59 = vadd.f32 %v3091_v58, %v3090_v56  ;;  %v2649_v2 = vadd.f32 %v2641_v61, %v4912_v12 }
0x149f   :  { %v2646_v62 = vadd.f32 %v3092_v59, %v2867_v57 }
0x14a1   :  { %v2650_v63 = vadd.f32 %v2646_v62, %v4909_v10 }
0x14a3   :  { %v2676_v3 = vrot.slane %v2650_v63, 7 }
0x14a5   :  { %v2678_v5 = vsel %vm2677_vm10, %v2676_v3, %v2649_v2 }
0x14a6   :  { %3437 = vmatmul.mubr.f32.vlgmr.msra.gmra.mrb[18].mxu0 %v2678_v5 }
0x14a7   :  { %4281 = shalt.err (!%p4278_p6)
}
0x14a8   :  { %s4282_s21 = scalar_lea.hbm %s4581_s17, 256 }
0x14a9   :  { %p4283_p7 = scmp.ne.s32.totalorder %s4581_s17, %s4282_s21  ;;  %p4286_p8 = scmp.lt.u32.totalorder %s4282_s21, %s4581_s17 }
0x14ab   :  { %p4288_p9 = pnand %p4286_p8, %p4283_p7 }
0x14ad   :  { %4291 = shalt.err (!%p4288_p9)
}
0x14ae   :  { %2777 = dma.vmem_to_hbm [thread:$0]  %s2772_s6, 256, %s4581_s17, [#allocation30], %s4392_s18, %s4392_s18, %s4393_s25  }
0x14af   :  { %s4416_s20 = smov [#allocation31]  }
0x14b0   :  { %s2783_s2 = sshll.u32 %s4416_s20, 4  ;;  %s2784_s2 = int_to_ptr.vmem [resolvable:$true] %s2783_s2 }
0x14b1   :  { %s4292_s0 = scalar_lea.vmem %s2784_s2, 256  ;;  %p4297_p11 = scmp.lt.s32.totalorder %s2784_s2, %s2784_s2 }
0x14b2   :  { %p4293_p10 = scmp.ne.s32.totalorder %s2784_s2, %s4292_s0  ;;  %p4298_p12 = scmp.lt.s32.totalorder %s4292_s0, %s4292_s0 }
0x14b4   :  { %p4299_p13 = por %p4298_p12, %p4297_p11 }
0x14b6   :  { %p4300_p0 = pnand %p4299_p13, %p4293_p10 }
0x14b8   :  { %4303 = shalt.err (!%p4300_p0)
}
0x14b9   :  { %s4304_s3 = scalar_lea.hbm %s4586_s9, 256 }
0x14ba   :  { %p4305_p1 = scmp.ne.s32.totalorder %s4586_s9, %s4304_s3  ;;  %p4308_p2 = scmp.lt.u32.totalorder %s4304_s3, %s4586_s9 }
0x14bc   :  { %p4310_p3 = pnand %p4308_p2, %p4305_p1 }
0x14be   :  { %4313 = shalt.err (!%p4310_p3)
}
0x14bf   :  { %2789 = dma.vmem_to_hbm [thread:$0]  %s2784_s2, 256, %s4586_s9, [#allocation30], %s4392_s18, %s4392_s18, %s4393_s25   ;;  %v2868_v10 = vld [vmem:[#allocation26] ss:$0 sm:$0xff]  ;;  %vm2750_vm11 = vcmask 9216  }
0x14c0   :  { %s4417_s17 = smov [#allocation28]  }
0x14c1   :  { %s2762_s8 = sshll.u32 %s4417_s17, 4  ;;  %s2763_s8 = int_to_ptr.vmem [resolvable:$true] %s2762_s8 }
0x14c2   :  { %s4314_s13 = scalar_lea.vmem %s2763_s8, 32  ;;  %p4319_p5 = scmp.lt.s32.totalorder %s2763_s8, %s2763_s8 }
0x14c3   :  { %p4315_p4 = scmp.ne.s32.totalorder %s2763_s8, %s4314_s13  ;;  %p4320_p6 = scmp.lt.s32.totalorder %s4314_s13, %s4314_s13 }
0x14c5   :  { %p4321_p7 = por %p4320_p6, %p4319_p5 }
0x14c7   :  { %p4322_p8 = pnand %p4321_p7, %p4315_p4 }
0x1579   :  { %v2746_v12 = vpop.f32.mrb[18].mxu0 }
0x157a   :  { %v2747_v6 = vadd.f32 %v2868_v10, %v2746_v12  ;;  %v3438_v8 = vpop.f32.mrb[19].mxu0 }
0x157c   :  { %2751 = vst.msk [vmem:[#allocation28] sm:$0x3] %vm2750_vm11, %v2747_v6 }
0x157d   :  { %4325 = shalt.err (!%p4322_p8)
}
0x157e   :  { %s4326_s9 = scalar_lea.hbm %s4576_s5, 32 }
0x157f   :  { %p4327_p9 = scmp.ne.s32.totalorder %s4576_s5, %s4326_s9  ;;  %p4330_p10 = scmp.lt.u32.totalorder %s4326_s9, %s4576_s5 }
0x1581   :  { %p4332_p11 = pnand %p4330_p10, %p4327_p9 }
0x1583   :  { %4335 = shalt.err (!%p4332_p11)
}
0x1584   :  { %2765 = dma.vmem_to_hbm [thread:$0]  %s2763_s8, 32, %s4576_s5, [#allocation4]  }
0x1585   :  { %4354 = dma.done.wait [#allocation4], 32  }
0x1586   :  { %4355 = vsyncadd [#allocation4], 4294967264 }
0x1587   :  { %4356 = dma.done.wait [#allocation30], 512  }
0x1588   :  { %4357 = vsyncadd [#allocation30], 4294966784 }
0x1589   :  { %2799 = vsyncpa [#allocation3], 1 }
0x158a   :  { %2800 = vsyncpa [#allocation6], 1 }
0x158b   :  { %2801 = vsyncpa [#allocation9], 1 }
0x158c   :  { %2802 = vsyncpa [#allocation12], 1 }
0x158d   :  { %2803 = vsyncpa [#allocation15], 1 }
0x158e   :  { %2804 = vsyncpa [#allocation18], 1 }
0x158f   :  { %2805 = vsyncpa [#allocation21], 1 }
0x1590   :  { %2806 = vsyncpa [#allocation24], 1 }
0x1591   :  { %2807 = vsyncpa [#allocation27], 1 }
0x1592   :  { %2808 = vsyncpa [#allocation4], 1 }
0x1593   :  { %2809 = vsyncpa [#allocation30], 1 }

</bundles_post_ra>
